<compile_context>
chip_gen: v6e
topology: v6e:2x2x1
jax: 0.10.0
libtpu: 0.0.40
codegen_flags: <defaults>
</compile_context>

<pallas_src>
import jax
import jax.numpy as jnp
from jax.experimental import pallas as pl
from jax.experimental.pallas import tpu as pltpu


def _ceil_to(n, m):
    return -(-n // m) * m


def _block_vmem_bytes(TOH, Ws, C4, OW, Cout, n_taps, in_isz, out_isz):
    """(8,128)-tile-padded VMEM footprint of all (double-buffered) pipeline blocks."""
    in_main = TOH * _ceil_to(C4, 8) * _ceil_to(Ws, 128) * in_isz
    in_halo = 1 * _ceil_to(C4, 8) * _ceil_to(Ws, 128) * in_isz
    out_blk = Cout * _ceil_to(TOH, 8) * _ceil_to(OW, 128) * out_isz
    w_blk = n_taps * _ceil_to(Cout, 8) * _ceil_to(C4, 128) * in_isz
    b_blk = _ceil_to(Cout, 8) * 128 * 4
    return 2 * (in_main + in_halo + out_blk + w_blk + b_blk)


def _pick_row_tile(OH, Ws, C4, OW, Cout, n_taps, in_isz, out_isz,
                   row_cap=32, vmem_budget=20 << 20):
    """Pick TOH = output rows per grid step.

    Validity: TOH divides OH and (TOH % 8 == 0 or TOH == OH) so the output block's
    sublane dim is legal.  Prefer the largest tile that fits both the unroll cap
    and the padded-VMEM budget, and prefer >= 2 row tiles (megacore balance).
    """
    cands = [d for d in range(1, OH + 1)
             if OH % d == 0 and (d % 8 == 0 or d == OH)]
    fits = [d for d in cands
            if d <= row_cap and _block_vmem_bytes(
                d, Ws, C4, OW, Cout, n_taps, in_isz, out_isz) <= vmem_budget]
    if not fits:
        return min(cands)          # least-bad fallback (tiny OH or pathological widths)
    halved = [d for d in fits if 2 * d <= OH]
    return max(halved) if halved else max(fits)


def _make_kernel(TOH, OW, C4, KS, Cout):
    assert KS == 2, "tap decomposition assumes kernel_size == 2*stride"
    n_taps = KS * KS
    G = 8 if TOH % 8 == 0 else TOH   # rows per store group (one sublane tile)

    def kernel(y_ref, halo_ref, w_ref, b_ref, o_ref):
        # y_ref:    (TOH, C4, Ws)   this tile's super-rows, channel-major per row
        # halo_ref: (1,   C4, Ws)   super-row shared with the next row tile
        # w_ref:    (4, Cout, C4)   per-tap weights (constant index map -> resident)
        # b_ref:    (Cout, 1) f32
        # o_ref:    (Cout, TOH, OW)
        w = [w_ref[i] for i in range(n_taps)]          # hoisted, tiny, resident
        bias = b_ref[...]                              # (Cout, 1) f32
        nxt = y_ref[0]                                 # super-row 0 of this tile
        for r0 in range(0, TOH, G):
            rows_out = []
            for g in range(G):
                r = r0 + g
                cur = nxt                                              # super-row r
                nxt = y_ref[r + 1] if r + 1 < TOH else halo_ref[0]     # super-row r+1
                srcs = (cur, nxt)
                acc = bias                                             # f32 accumulate
                for a in range(KS):           # row tap
                    for bc in range(KS):      # column tap (bc=1 -> cheap lane shift)
                        acc = acc + jnp.dot(
                            w[a * KS + bc], srcs[a][:, bc:bc + OW],
                            preferred_element_type=jnp.float32)
                rows_out.append(acc.astype(o_ref.dtype))
            # One unmasked, sublane-aligned store per group of 8 output rows.
            o_ref[:, r0:r0 + G, :] = jnp.stack(rows_out, axis=1)

    return kernel


def reflect_conv_forward(x_nchw, weight, bias, *, kernel_size=4, stride=2, pad=1,
                         compute_dtype=jnp.bfloat16):
    """Forward pass of reflect_conv.  x_nchw: [B, Cin, H, W] (NCHW, like PyTorch).

    compute_dtype controls the streamed input/weight dtype (accumulation is always
    f32).  Default bf16 halves HBM bytes on v6e/v7x; pass jnp.float32 for the
    bit-tight path.  Output dtype always matches the input dtype.
    """
    B, Cin, H, W = x_nchw.shape
    Cout = weight.shape[0]
    KH = KW = kernel_size
    if not (pad < H and pad < W):
        raise ValueError("ReflectionPad2d requires pad < spatial dims")
    assert kernel_size == 2 * stride, "kernel implemented for kernel_size == 2*stride"
    KS = KH // stride                                   # taps per spatial dim (= 2)
    cdt = jnp.dtype(compute_dtype or x_nchw.dtype)
    out_dtype = x_nchw.dtype

    # --- Wrapper layout glue (reflection pad + channel-major space-to-depth) ---
    x = x_nchw.astype(cdt)                              # cast early: halves pad/s2d traffic
    xp = jnp.pad(x, ((0, 0), (0, 0), (pad, pad), (pad, pad)), mode="reflect")
    Hp, Wp = H + 2 * pad, W + 2 * pad
    OH = (Hp - KH) // stride + 1
    OW = (Wp - KW) // stride + 1
    Hs, Ws = OH + KS - 1, OW + KS - 1                   # super-rows / super-cols
    xp = xp[:, :, :stride * Hs, :stride * Ws]           # trim rows/cols never read
    C4 = stride * stride * Cin

    # y[b, si, c4=(di,dj,c), sj] = xp[b, c, stride*si+di, stride*sj+dj]
    y = xp.reshape(B, Cin, Hs, stride, Ws, stride)
    y = jnp.transpose(y, (0, 2, 3, 5, 1, 4))            # (B, Hs, di, dj, Cin, Ws)
    y = y.reshape(B, Hs, C4, Ws)

    # PyTorch conv weight [Cout, Cin, KH, KW] -> one (Cout, C4) matrix per tap (a, bc)
    # with kh = stride*a + di, kw = stride*bc + dj, matching y's (di, dj, c) packing.
    w4 = weight.reshape(Cout, Cin, KS, stride, KS, stride)   # (co, c, a, di, bc, dj)
    w4 = jnp.transpose(w4, (2, 4, 0, 3, 5, 1))               # (a, bc, co, di, dj, c)
    w4 = w4.reshape(KS * KS, Cout, C4).astype(cdt)
    b2 = bias.reshape(Cout, 1).astype(jnp.float32)

    # --- Tiling ---
    in_isz = jnp.dtype(cdt).itemsize
    out_isz = jnp.dtype(out_dtype).itemsize
    TOH = _pick_row_tile(OH, Ws, C4, OW, Cout, KS * KS, in_isz, out_isz)
    nt = OH // TOH
    blk_bytes = _block_vmem_bytes(TOH, Ws, C4, OW, Cout, KS * KS, in_isz, out_isz)
    vmem_limit = int(min(max(32 << 20, blk_bytes + (8 << 20)), 64 << 20))

    kernel = _make_kernel(TOH, OW, C4, KS, Cout)

    out = pl.pallas_call(
        kernel,
        out_shape=jax.ShapeDtypeStruct((B, Cout, OH, OW), out_dtype),
        grid=(B, nt),
        in_specs=[
            # main block: super-rows [t*TOH, (t+1)*TOH) of this batch image
            pl.BlockSpec((None, TOH, C4, Ws), lambda b, t: (b, t, 0, 0)),
            # halo: super-row (t+1)*TOH (windows overlap adjacent row tiles)
            pl.BlockSpec((None, KS - 1, C4, Ws), lambda b, t: (b, (t + 1) * TOH, 0, 0)),
            # per-tap weights + bias: constant index map -> stay resident in VMEM
            pl.BlockSpec((KS * KS, Cout, C4), lambda b, t: (0, 0, 0)),
            pl.BlockSpec((Cout, 1), lambda b, t: (0, 0)),
        ],
        out_specs=pl.BlockSpec((None, Cout, TOH, OW), lambda b, t: (b, 0, t, 0)),
        compiler_params=pltpu.CompilerParams(
            dimension_semantics=("parallel", "parallel"),
            vmem_limit_bytes=vmem_limit),
    )(y, y, w4, b2)

    return out                                           # already NCHW (B, Cout, OH, OW)


if __name__ == "__main__":
    # Module config (defaults of reflect_conv): kernel_size=4, stride=2, pad=1.
    B, Cin, H, W = 2, 4, 16, 16
    Cout = 8

    key = jax.random.PRNGKey(0)
    kx, kw, kb = jax.random.split(key, 3)
    x = jax.random.normal(kx, (B, Cin, H, W), dtype=jnp.float32)
    fan_in = Cin * 4 * 4
    bound = 1.0 / jnp.sqrt(fan_in)
    weight = jax.random.uniform(kw, (Cout, Cin, 4, 4), jnp.float32, -bound, bound)
    bias = jax.random.uniform(kb, (Cout,), jnp.float32, -bound, bound)

    # f32 compute path (bit-tight check) and default bf16 streaming path.
    out_f32 = jax.block_until_ready(
        reflect_conv_forward(x, weight, bias, compute_dtype=jnp.float32))
    out_bf16 = jax.block_until_ready(
        reflect_conv_forward(x, weight, bias))

    # Reference: lax conv on the reflection-padded input.
    xp = jnp.pad(x, ((0, 0), (0, 0), (1, 1), (1, 1)), mode="reflect")
    ref = jax.lax.conv_general_dilated(
        xp, weight, window_strides=(2, 2), padding="VALID",
        dimension_numbers=("NCHW", "OIHW", "NCHW"))
    ref = ref + bias.reshape(1, -1, 1, 1)

    assert out_f32.shape == (B, Cout, 8, 8), out_f32.shape
    assert jnp.allclose(out_f32, ref, atol=1e-4, rtol=1e-4), "f32 path mismatch"
    assert jnp.allclose(out_bf16, ref, atol=2e-2, rtol=2e-2), "bf16 path mismatch"
    print("KERNEL_OK")
</pallas_src>

<mosaic_0001>
module attributes {stable_mosaic.version = 11 : i64} {
  func.func @kernel(%arg0: i32, %arg1: i32, %arg2: memref<1x8x16x9xf32, #tpu.memory_space<vmem>>, %arg3: memref<1x1x16x9xf32, #tpu.memory_space<vmem>>, %arg4: memref<4x8x16xf32, #tpu.memory_space<vmem>>, %arg5: memref<8x1xf32, #tpu.memory_space<vmem>>, %arg6: memref<1x8x8x8xf32, #tpu.memory_space<vmem>>) attributes {dimension_semantics = [#tpu.dimension_semantics<parallel>, #tpu.dimension_semantics<parallel>], iteration_bounds = array<i64: 2, 1>, scalar_prefetch = 0 : i64, scratch_operands = 0 : i64, tpu.core_type = #tpu.core_type<tc>, window_params = [{transform_indices = @transform_0, window_bounds = array<i64: 1, 8, 16, 9>}, {transform_indices = @transform_1, window_bounds = array<i64: 1, 1, 16, 9>}, {pipeline_mode = #tpu.pipeline_mode<synchronous>, transform_indices = @transform_2, window_bounds = array<i64: 4, 8, 16>}, {pipeline_mode = #tpu.pipeline_mode<synchronous>, transform_indices = @transform_3, window_bounds = array<i64: 8, 1>}, {transform_indices = @transform_4, window_bounds = array<i64: 1, 8, 8, 8>}]} {
    %c0 = arith.constant 0 : index
    %c0_0 = arith.constant 0 : index
    %c0_1 = arith.constant 0 : index
    %0 = vector.load %arg4[%c0, %c0_0, %c0_1] : memref<4x8x16xf32, #tpu.memory_space<vmem>>, vector<1x8x16xf32>
    %1 = vector.shape_cast %0 : vector<1x8x16xf32> to vector<8x16xf32>
    %c1 = arith.constant 1 : index
    %c0_2 = arith.constant 0 : index
    %c0_3 = arith.constant 0 : index
    %2 = vector.load %arg4[%c1, %c0_2, %c0_3] : memref<4x8x16xf32, #tpu.memory_space<vmem>>, vector<1x8x16xf32>
    %3 = vector.shape_cast %2 : vector<1x8x16xf32> to vector<8x16xf32>
    %c2 = arith.constant 2 : index
    %c0_4 = arith.constant 0 : index
    %c0_5 = arith.constant 0 : index
    %4 = vector.load %arg4[%c2, %c0_4, %c0_5] : memref<4x8x16xf32, #tpu.memory_space<vmem>>, vector<1x8x16xf32>
    %5 = vector.shape_cast %4 : vector<1x8x16xf32> to vector<8x16xf32>
    %c3 = arith.constant 3 : index
    %c0_6 = arith.constant 0 : index
    %c0_7 = arith.constant 0 : index
    %6 = vector.load %arg4[%c3, %c0_6, %c0_7] : memref<4x8x16xf32, #tpu.memory_space<vmem>>, vector<1x8x16xf32>
    %7 = vector.shape_cast %6 : vector<1x8x16xf32> to vector<8x16xf32>
    %c0_8 = arith.constant 0 : index
    %c0_9 = arith.constant 0 : index
    %8 = vector.load %arg5[%c0_8, %c0_9] : memref<8x1xf32, #tpu.memory_space<vmem>>, vector<8x1xf32>
    %c0_10 = arith.constant 0 : index
    %c0_11 = arith.constant 0 : index
    %c0_12 = arith.constant 0 : index
    %c0_13 = arith.constant 0 : index
    %9 = vector.load %arg2[%c0_10, %c0_11, %c0_12, %c0_13] : memref<1x8x16x9xf32, #tpu.memory_space<vmem>>, vector<1x1x16x9xf32>
    %10 = vector.shape_cast %9 : vector<1x1x16x9xf32> to vector<16x9xf32>
    %c0_14 = arith.constant 0 : index
    %c1_15 = arith.constant 1 : index
    %c0_16 = arith.constant 0 : index
    %c0_17 = arith.constant 0 : index
    %11 = vector.load %arg2[%c0_14, %c1_15, %c0_16, %c0_17] : memref<1x8x16x9xf32, #tpu.memory_space<vmem>>, vector<1x1x16x9xf32>
    %12 = vector.shape_cast %11 : vector<1x1x16x9xf32> to vector<16x9xf32>
    %13 = vector.extract_strided_slice %10 {offsets = [0, 0], sizes = [16, 8], strides = [1, 1]} : vector<16x9xf32> to vector<16x8xf32>
    %cst = arith.constant dense<0.000000e+00> : vector<8x8xf32>
    %14 = tpu.matmul %1, %13, %cst {dimension_numbers = #tpu.dot_dimension_numbers<[1], [0], [0], [1], [0, 0, 1, 1], [], []>} : vector<8x16xf32>, vector<16x8xf32>, vector<8x8xf32> -> vector<8x8xf32>
    %15 = vector.broadcast %8 : vector<8x1xf32> to vector<8x8xf32>
    %16 = arith.addf %15, %14 : vector<8x8xf32>
    %17 = vector.extract_strided_slice %10 {offsets = [0, 1], sizes = [16, 8], strides = [1, 1]} : vector<16x9xf32> to vector<16x8xf32>
    %cst_18 = arith.constant dense<0.000000e+00> : vector<8x8xf32>
    %18 = tpu.matmul %3, %17, %cst_18 {dimension_numbers = #tpu.dot_dimension_numbers<[1], [0], [0], [1], [0, 0, 1, 1], [], []>} : vector<8x16xf32>, vector<16x8xf32>, vector<8x8xf32> -> vector<8x8xf32>
    %19 = arith.addf %16, %18 : vector<8x8xf32>
    %20 = vector.extract_strided_slice %12 {offsets = [0, 0], sizes = [16, 8], strides = [1, 1]} : vector<16x9xf32> to vector<16x8xf32>
    %cst_19 = arith.constant dense<0.000000e+00> : vector<8x8xf32>
    %21 = tpu.matmul %5, %20, %cst_19 {dimension_numbers = #tpu.dot_dimension_numbers<[1], [0], [0], [1], [0, 0, 1, 1], [], []>} : vector<8x16xf32>, vector<16x8xf32>, vector<8x8xf32> -> vector<8x8xf32>
    %22 = arith.addf %19, %21 : vector<8x8xf32>
    %23 = vector.extract_strided_slice %12 {offsets = [0, 1], sizes = [16, 8], strides = [1, 1]} : vector<16x9xf32> to vector<16x8xf32>
    %cst_20 = arith.constant dense<0.000000e+00> : vector<8x8xf32>
    %24 = tpu.matmul %7, %23, %cst_20 {dimension_numbers = #tpu.dot_dimension_numbers<[1], [0], [0], [1], [0, 0, 1, 1], [], []>} : vector<8x16xf32>, vector<16x8xf32>, vector<8x8xf32> -> vector<8x8xf32>
    %25 = arith.addf %22, %24 : vector<8x8xf32>
    %c0_21 = arith.constant 0 : index
    %c2_22 = arith.constant 2 : index
    %c0_23 = arith.constant 0 : index
    %c0_24 = arith.constant 0 : index
    %26 = vector.load %arg2[%c0_21, %c2_22, %c0_23, %c0_24] : memref<1x8x16x9xf32, #tpu.memory_space<vmem>>, vector<1x1x16x9xf32>
    %27 = vector.shape_cast %26 : vector<1x1x16x9xf32> to vector<16x9xf32>
    %28 = vector.extract_strided_slice %12 {offsets = [0, 0], sizes = [16, 8], strides = [1, 1]} : vector<16x9xf32> to vector<16x8xf32>
    %cst_25 = arith.constant dense<0.000000e+00> : vector<8x8xf32>
    %29 = tpu.matmul %1, %28, %cst_25 {dimension_numbers = #tpu.dot_dimension_numbers<[1], [0], [0], [1], [0, 0, 1, 1], [], []>} : vector<8x16xf32>, vector<16x8xf32>, vector<8x8xf32> -> vector<8x8xf32>
    %30 = vector.broadcast %8 : vector<8x1xf32> to vector<8x8xf32>
    %31 = arith.addf %30, %29 : vector<8x8xf32>
    %32 = vector.extract_strided_slice %12 {offsets = [0, 1], sizes = [16, 8], strides = [1, 1]} : vector<16x9xf32> to vector<16x8xf32>
    %cst_26 = arith.constant dense<0.000000e+00> : vector<8x8xf32>
    %33 = tpu.matmul %3, %32, %cst_26 {dimension_numbers = #tpu.dot_dimension_numbers<[1], [0], [0], [1], [0, 0, 1, 1], [], []>} : vector<8x16xf32>, vector<16x8xf32>, vector<8x8xf32> -> vector<8x8xf32>
    %34 = arith.addf %31, %33 : vector<8x8xf32>
    %35 = vector.extract_strided_slice %27 {offsets = [0, 0], sizes = [16, 8], strides = [1, 1]} : vector<16x9xf32> to vector<16x8xf32>
    %cst_27 = arith.constant dense<0.000000e+00> : vector<8x8xf32>
    %36 = tpu.matmul %5, %35, %cst_27 {dimension_numbers = #tpu.dot_dimension_numbers<[1], [0], [0], [1], [0, 0, 1, 1], [], []>} : vector<8x16xf32>, vector<16x8xf32>, vector<8x8xf32> -> vector<8x8xf32>
    %37 = arith.addf %34, %36 : vector<8x8xf32>
    %38 = vector.extract_strided_slice %27 {offsets = [0, 1], sizes = [16, 8], strides = [1, 1]} : vector<16x9xf32> to vector<16x8xf32>
    %cst_28 = arith.constant dense<0.000000e+00> : vector<8x8xf32>
    %39 = tpu.matmul %7, %38, %cst_28 {dimension_numbers = #tpu.dot_dimension_numbers<[1], [0], [0], [1], [0, 0, 1, 1], [], []>} : vector<8x16xf32>, vector<16x8xf32>, vector<8x8xf32> -> vector<8x8xf32>
    %40 = arith.addf %37, %39 : vector<8x8xf32>
    %c0_29 = arith.constant 0 : index
    %c3_30 = arith.constant 3 : index
    %c0_31 = arith.constant 0 : index
    %c0_32 = arith.constant 0 : index
    %41 = vector.load %arg2[%c0_29, %c3_30, %c0_31, %c0_32] : memref<1x8x16x9xf32, #tpu.memory_space<vmem>>, vector<1x1x16x9xf32>
    %42 = vector.shape_cast %41 : vector<1x1x16x9xf32> to vector<16x9xf32>
    %43 = vector.extract_strided_slice %27 {offsets = [0, 0], sizes = [16, 8], strides = [1, 1]} : vector<16x9xf32> to vector<16x8xf32>
    %cst_33 = arith.constant dense<0.000000e+00> : vector<8x8xf32>
    %44 = tpu.matmul %1, %43, %cst_33 {dimension_numbers = #tpu.dot_dimension_numbers<[1], [0], [0], [1], [0, 0, 1, 1], [], []>} : vector<8x16xf32>, vector<16x8xf32>, vector<8x8xf32> -> vector<8x8xf32>
    %45 = vector.broadcast %8 : vector<8x1xf32> to vector<8x8xf32>
    %46 = arith.addf %45, %44 : vector<8x8xf32>
    %47 = vector.extract_strided_slice %27 {offsets = [0, 1], sizes = [16, 8], strides = [1, 1]} : vector<16x9xf32> to vector<16x8xf32>
    %cst_34 = arith.constant dense<0.000000e+00> : vector<8x8xf32>
    %48 = tpu.matmul %3, %47, %cst_34 {dimension_numbers = #tpu.dot_dimension_numbers<[1], [0], [0], [1], [0, 0, 1, 1], [], []>} : vector<8x16xf32>, vector<16x8xf32>, vector<8x8xf32> -> vector<8x8xf32>
    %49 = arith.addf %46, %48 : vector<8x8xf32>
    %50 = vector.extract_strided_slice %42 {offsets = [0, 0], sizes = [16, 8], strides = [1, 1]} : vector<16x9xf32> to vector<16x8xf32>
    %cst_35 = arith.constant dense<0.000000e+00> : vector<8x8xf32>
    %51 = tpu.matmul %5, %50, %cst_35 {dimension_numbers = #tpu.dot_dimension_numbers<[1], [0], [0], [1], [0, 0, 1, 1], [], []>} : vector<8x16xf32>, vector<16x8xf32>, vector<8x8xf32> -> vector<8x8xf32>
    %52 = arith.addf %49, %51 : vector<8x8xf32>
    %53 = vector.extract_strided_slice %42 {offsets = [0, 1], sizes = [16, 8], strides = [1, 1]} : vector<16x9xf32> to vector<16x8xf32>
    %cst_36 = arith.constant dense<0.000000e+00> : vector<8x8xf32>
    %54 = tpu.matmul %7, %53, %cst_36 {dimension_numbers = #tpu.dot_dimension_numbers<[1], [0], [0], [1], [0, 0, 1, 1], [], []>} : vector<8x16xf32>, vector<16x8xf32>, vector<8x8xf32> -> vector<8x8xf32>
    %55 = arith.addf %52, %54 : vector<8x8xf32>
    %c0_37 = arith.constant 0 : index
    %c4 = arith.constant 4 : index
    %c0_38 = arith.constant 0 : index
    %c0_39 = arith.constant 0 : index
    %56 = vector.load %arg2[%c0_37, %c4, %c0_38, %c0_39] : memref<1x8x16x9xf32, #tpu.memory_space<vmem>>, vector<1x1x16x9xf32>
    %57 = vector.shape_cast %56 : vector<1x1x16x9xf32> to vector<16x9xf32>
    %58 = vector.extract_strided_slice %42 {offsets = [0, 0], sizes = [16, 8], strides = [1, 1]} : vector<16x9xf32> to vector<16x8xf32>
    %cst_40 = arith.constant dense<0.000000e+00> : vector<8x8xf32>
    %59 = tpu.matmul %1, %58, %cst_40 {dimension_numbers = #tpu.dot_dimension_numbers<[1], [0], [0], [1], [0, 0, 1, 1], [], []>} : vector<8x16xf32>, vector<16x8xf32>, vector<8x8xf32> -> vector<8x8xf32>
    %60 = vector.broadcast %8 : vector<8x1xf32> to vector<8x8xf32>
    %61 = arith.addf %60, %59 : vector<8x8xf32>
    %62 = vector.extract_strided_slice %42 {offsets = [0, 1], sizes = [16, 8], strides = [1, 1]} : vector<16x9xf32> to vector<16x8xf32>
    %cst_41 = arith.constant dense<0.000000e+00> : vector<8x8xf32>
    %63 = tpu.matmul %3, %62, %cst_41 {dimension_numbers = #tpu.dot_dimension_numbers<[1], [0], [0], [1], [0, 0, 1, 1], [], []>} : vector<8x16xf32>, vector<16x8xf32>, vector<8x8xf32> -> vector<8x8xf32>
    %64 = arith.addf %61, %63 : vector<8x8xf32>
    %65 = vector.extract_strided_slice %57 {offsets = [0, 0], sizes = [16, 8], strides = [1, 1]} : vector<16x9xf32> to vector<16x8xf32>
    %cst_42 = arith.constant dense<0.000000e+00> : vector<8x8xf32>
    %66 = tpu.matmul %5, %65, %cst_42 {dimension_numbers = #tpu.dot_dimension_numbers<[1], [0], [0], [1], [0, 0, 1, 1], [], []>} : vector<8x16xf32>, vector<16x8xf32>, vector<8x8xf32> -> vector<8x8xf32>
    %67 = arith.addf %64, %66 : vector<8x8xf32>
    %68 = vector.extract_strided_slice %57 {offsets = [0, 1], sizes = [16, 8], strides = [1, 1]} : vector<16x9xf32> to vector<16x8xf32>
    %cst_43 = arith.constant dense<0.000000e+00> : vector<8x8xf32>
    %69 = tpu.matmul %7, %68, %cst_43 {dimension_numbers = #tpu.dot_dimension_numbers<[1], [0], [0], [1], [0, 0, 1, 1], [], []>} : vector<8x16xf32>, vector<16x8xf32>, vector<8x8xf32> -> vector<8x8xf32>
    %70 = arith.addf %67, %69 : vector<8x8xf32>
    %c0_44 = arith.constant 0 : index
    %c5 = arith.constant 5 : index
    %c0_45 = arith.constant 0 : index
    %c0_46 = arith.constant 0 : index
    %71 = vector.load %arg2[%c0_44, %c5, %c0_45, %c0_46] : memref<1x8x16x9xf32, #tpu.memory_space<vmem>>, vector<1x1x16x9xf32>
    %72 = vector.shape_cast %71 : vector<1x1x16x9xf32> to vector<16x9xf32>
    %73 = vector.extract_strided_slice %57 {offsets = [0, 0], sizes = [16, 8], strides = [1, 1]} : vector<16x9xf32> to vector<16x8xf32>
    %cst_47 = arith.constant dense<0.000000e+00> : vector<8x8xf32>
    %74 = tpu.matmul %1, %73, %cst_47 {dimension_numbers = #tpu.dot_dimension_numbers<[1], [0], [0], [1], [0, 0, 1, 1], [], []>} : vector<8x16xf32>, vector<16x8xf32>, vector<8x8xf32> -> vector<8x8xf32>
    %75 = vector.broadcast %8 : vector<8x1xf32> to vector<8x8xf32>
    %76 = arith.addf %75, %74 : vector<8x8xf32>
    %77 = vector.extract_strided_slice %57 {offsets = [0, 1], sizes = [16, 8], strides = [1, 1]} : vector<16x9xf32> to vector<16x8xf32>
    %cst_48 = arith.constant dense<0.000000e+00> : vector<8x8xf32>
    %78 = tpu.matmul %3, %77, %cst_48 {dimension_numbers = #tpu.dot_dimension_numbers<[1], [0], [0], [1], [0, 0, 1, 1], [], []>} : vector<8x16xf32>, vector<16x8xf32>, vector<8x8xf32> -> vector<8x8xf32>
    %79 = arith.addf %76, %78 : vector<8x8xf32>
    %80 = vector.extract_strided_slice %72 {offsets = [0, 0], sizes = [16, 8], strides = [1, 1]} : vector<16x9xf32> to vector<16x8xf32>
    %cst_49 = arith.constant dense<0.000000e+00> : vector<8x8xf32>
    %81 = tpu.matmul %5, %80, %cst_49 {dimension_numbers = #tpu.dot_dimension_numbers<[1], [0], [0], [1], [0, 0, 1, 1], [], []>} : vector<8x16xf32>, vector<16x8xf32>, vector<8x8xf32> -> vector<8x8xf32>
    %82 = arith.addf %79, %81 : vector<8x8xf32>
    %83 = vector.extract_strided_slice %72 {offsets = [0, 1], sizes = [16, 8], strides = [1, 1]} : vector<16x9xf32> to vector<16x8xf32>
    %cst_50 = arith.constant dense<0.000000e+00> : vector<8x8xf32>
    %84 = tpu.matmul %7, %83, %cst_50 {dimension_numbers = #tpu.dot_dimension_numbers<[1], [0], [0], [1], [0, 0, 1, 1], [], []>} : vector<8x16xf32>, vector<16x8xf32>, vector<8x8xf32> -> vector<8x8xf32>
    %85 = arith.addf %82, %84 : vector<8x8xf32>
    %c0_51 = arith.constant 0 : index
    %c6 = arith.constant 6 : index
    %c0_52 = arith.constant 0 : index
    %c0_53 = arith.constant 0 : index
    %86 = vector.load %arg2[%c0_51, %c6, %c0_52, %c0_53] : memref<1x8x16x9xf32, #tpu.memory_space<vmem>>, vector<1x1x16x9xf32>
    %87 = vector.shape_cast %86 : vector<1x1x16x9xf32> to vector<16x9xf32>
    %88 = vector.extract_strided_slice %72 {offsets = [0, 0], sizes = [16, 8], strides = [1, 1]} : vector<16x9xf32> to vector<16x8xf32>
    %cst_54 = arith.constant dense<0.000000e+00> : vector<8x8xf32>
    %89 = tpu.matmul %1, %88, %cst_54 {dimension_numbers = #tpu.dot_dimension_numbers<[1], [0], [0], [1], [0, 0, 1, 1], [], []>} : vector<8x16xf32>, vector<16x8xf32>, vector<8x8xf32> -> vector<8x8xf32>
    %90 = vector.broadcast %8 : vector<8x1xf32> to vector<8x8xf32>
    %91 = arith.addf %90, %89 : vector<8x8xf32>
    %92 = vector.extract_strided_slice %72 {offsets = [0, 1], sizes = [16, 8], strides = [1, 1]} : vector<16x9xf32> to vector<16x8xf32>
    %cst_55 = arith.constant dense<0.000000e+00> : vector<8x8xf32>
    %93 = tpu.matmul %3, %92, %cst_55 {dimension_numbers = #tpu.dot_dimension_numbers<[1], [0], [0], [1], [0, 0, 1, 1], [], []>} : vector<8x16xf32>, vector<16x8xf32>, vector<8x8xf32> -> vector<8x8xf32>
    %94 = arith.addf %91, %93 : vector<8x8xf32>
    %95 = vector.extract_strided_slice %87 {offsets = [0, 0], sizes = [16, 8], strides = [1, 1]} : vector<16x9xf32> to vector<16x8xf32>
    %cst_56 = arith.constant dense<0.000000e+00> : vector<8x8xf32>
    %96 = tpu.matmul %5, %95, %cst_56 {dimension_numbers = #tpu.dot_dimension_numbers<[1], [0], [0], [1], [0, 0, 1, 1], [], []>} : vector<8x16xf32>, vector<16x8xf32>, vector<8x8xf32> -> vector<8x8xf32>
    %97 = arith.addf %94, %96 : vector<8x8xf32>
    %98 = vector.extract_strided_slice %87 {offsets = [0, 1], sizes = [16, 8], strides = [1, 1]} : vector<16x9xf32> to vector<16x8xf32>
    %cst_57 = arith.constant dense<0.000000e+00> : vector<8x8xf32>
    %99 = tpu.matmul %7, %98, %cst_57 {dimension_numbers = #tpu.dot_dimension_numbers<[1], [0], [0], [1], [0, 0, 1, 1], [], []>} : vector<8x16xf32>, vector<16x8xf32>, vector<8x8xf32> -> vector<8x8xf32>
    %100 = arith.addf %97, %99 : vector<8x8xf32>
    %c0_58 = arith.constant 0 : index
    %c7 = arith.constant 7 : index
    %c0_59 = arith.constant 0 : index
    %c0_60 = arith.constant 0 : index
    %101 = vector.load %arg2[%c0_58, %c7, %c0_59, %c0_60] : memref<1x8x16x9xf32, #tpu.memory_space<vmem>>, vector<1x1x16x9xf32>
    %102 = vector.shape_cast %101 : vector<1x1x16x9xf32> to vector<16x9xf32>
    %103 = vector.extract_strided_slice %87 {offsets = [0, 0], sizes = [16, 8], strides = [1, 1]} : vector<16x9xf32> to vector<16x8xf32>
    %cst_61 = arith.constant dense<0.000000e+00> : vector<8x8xf32>
    %104 = tpu.matmul %1, %103, %cst_61 {dimension_numbers = #tpu.dot_dimension_numbers<[1], [0], [0], [1], [0, 0, 1, 1], [], []>} : vector<8x16xf32>, vector<16x8xf32>, vector<8x8xf32> -> vector<8x8xf32>
    %105 = vector.broadcast %8 : vector<8x1xf32> to vector<8x8xf32>
    %106 = arith.addf %105, %104 : vector<8x8xf32>
    %107 = vector.extract_strided_slice %87 {offsets = [0, 1], sizes = [16, 8], strides = [1, 1]} : vector<16x9xf32> to vector<16x8xf32>
    %cst_62 = arith.constant dense<0.000000e+00> : vector<8x8xf32>
    %108 = tpu.matmul %3, %107, %cst_62 {dimension_numbers = #tpu.dot_dimension_numbers<[1], [0], [0], [1], [0, 0, 1, 1], [], []>} : vector<8x16xf32>, vector<16x8xf32>, vector<8x8xf32> -> vector<8x8xf32>
    %109 = arith.addf %106, %108 : vector<8x8xf32>
    %110 = vector.extract_strided_slice %102 {offsets = [0, 0], sizes = [16, 8], strides = [1, 1]} : vector<16x9xf32> to vector<16x8xf32>
    %cst_63 = arith.constant dense<0.000000e+00> : vector<8x8xf32>
    %111 = tpu.matmul %5, %110, %cst_63 {dimension_numbers = #tpu.dot_dimension_numbers<[1], [0], [0], [1], [0, 0, 1, 1], [], []>} : vector<8x16xf32>, vector<16x8xf32>, vector<8x8xf32> -> vector<8x8xf32>
    %112 = arith.addf %109, %111 : vector<8x8xf32>
    %113 = vector.extract_strided_slice %102 {offsets = [0, 1], sizes = [16, 8], strides = [1, 1]} : vector<16x9xf32> to vector<16x8xf32>
    %cst_64 = arith.constant dense<0.000000e+00> : vector<8x8xf32>
    %114 = tpu.matmul %7, %113, %cst_64 {dimension_numbers = #tpu.dot_dimension_numbers<[1], [0], [0], [1], [0, 0, 1, 1], [], []>} : vector<8x16xf32>, vector<16x8xf32>, vector<8x8xf32> -> vector<8x8xf32>
    %115 = arith.addf %112, %114 : vector<8x8xf32>
    %c0_65 = arith.constant 0 : index
    %c0_66 = arith.constant 0 : index
    %c0_67 = arith.constant 0 : index
    %c0_68 = arith.constant 0 : index
    %116 = vector.load %arg3[%c0_65, %c0_66, %c0_67, %c0_68] : memref<1x1x16x9xf32, #tpu.memory_space<vmem>>, vector<1x1x16x9xf32>
    %117 = vector.shape_cast %116 : vector<1x1x16x9xf32> to vector<16x9xf32>
    %118 = vector.extract_strided_slice %102 {offsets = [0, 0], sizes = [16, 8], strides = [1, 1]} : vector<16x9xf32> to vector<16x8xf32>
    %cst_69 = arith.constant dense<0.000000e+00> : vector<8x8xf32>
    %119 = tpu.matmul %1, %118, %cst_69 {dimension_numbers = #tpu.dot_dimension_numbers<[1], [0], [0], [1], [0, 0, 1, 1], [], []>} : vector<8x16xf32>, vector<16x8xf32>, vector<8x8xf32> -> vector<8x8xf32>
    %120 = vector.broadcast %8 : vector<8x1xf32> to vector<8x8xf32>
    %121 = arith.addf %120, %119 : vector<8x8xf32>
    %122 = vector.extract_strided_slice %102 {offsets = [0, 1], sizes = [16, 8], strides = [1, 1]} : vector<16x9xf32> to vector<16x8xf32>
    %cst_70 = arith.constant dense<0.000000e+00> : vector<8x8xf32>
    %123 = tpu.matmul %3, %122, %cst_70 {dimension_numbers = #tpu.dot_dimension_numbers<[1], [0], [0], [1], [0, 0, 1, 1], [], []>} : vector<8x16xf32>, vector<16x8xf32>, vector<8x8xf32> -> vector<8x8xf32>
    %124 = arith.addf %121, %123 : vector<8x8xf32>
    %125 = vector.extract_strided_slice %117 {offsets = [0, 0], sizes = [16, 8], strides = [1, 1]} : vector<16x9xf32> to vector<16x8xf32>
    %cst_71 = arith.constant dense<0.000000e+00> : vector<8x8xf32>
    %126 = tpu.matmul %5, %125, %cst_71 {dimension_numbers = #tpu.dot_dimension_numbers<[1], [0], [0], [1], [0, 0, 1, 1], [], []>} : vector<8x16xf32>, vector<16x8xf32>, vector<8x8xf32> -> vector<8x8xf32>
    %127 = arith.addf %124, %126 : vector<8x8xf32>
    %128 = vector.extract_strided_slice %117 {offsets = [0, 1], sizes = [16, 8], strides = [1, 1]} : vector<16x9xf32> to vector<16x8xf32>
    %cst_72 = arith.constant dense<0.000000e+00> : vector<8x8xf32>
    %129 = tpu.matmul %7, %128, %cst_72 {dimension_numbers = #tpu.dot_dimension_numbers<[1], [0], [0], [1], [0, 0, 1, 1], [], []>} : vector<8x16xf32>, vector<16x8xf32>, vector<8x8xf32> -> vector<8x8xf32>
    %130 = arith.addf %127, %129 : vector<8x8xf32>
    %131 = vector.shape_cast %25 : vector<8x8xf32> to vector<8x1x8xf32>
    %132 = vector.shape_cast %40 : vector<8x8xf32> to vector<8x1x8xf32>
    %133 = vector.shape_cast %55 : vector<8x8xf32> to vector<8x1x8xf32>
    %134 = vector.shape_cast %70 : vector<8x8xf32> to vector<8x1x8xf32>
    %135 = vector.shape_cast %85 : vector<8x8xf32> to vector<8x1x8xf32>
    %136 = vector.shape_cast %100 : vector<8x8xf32> to vector<8x1x8xf32>
    %137 = vector.shape_cast %115 : vector<8x8xf32> to vector<8x1x8xf32>
    %138 = vector.shape_cast %130 : vector<8x8xf32> to vector<8x1x8xf32>
    %139 = tpu.concatenate %131, %132, %133, %134, %135, %136, %137, %138 in 1 : vector<8x1x8xf32>, vector<8x1x8xf32>, vector<8x1x8xf32>, vector<8x1x8xf32>, vector<8x1x8xf32>, vector<8x1x8xf32>, vector<8x1x8xf32>, vector<8x1x8xf32> -> vector<8x8x8xf32>
    %c0_73 = arith.constant 0 : index
    %c0_74 = arith.constant 0 : index
    %c0_75 = arith.constant 0 : index
    %c0_76 = arith.constant 0 : index
    %140 = vector.load %arg6[%c0_73, %c0_74, %c0_75, %c0_76] : memref<1x8x8x8xf32, #tpu.memory_space<vmem>>, vector<1x8x8x8xf32>
    %141 = vector.shape_cast %140 : vector<1x8x8x8xf32> to vector<8x8x8xf32>
    %142 = vector.shape_cast %139 : vector<8x8x8xf32> to vector<1x8x8x8xf32>
    tpu.vector_store %arg6[%c0_73, %c0_74, %c0_75, %c0_76], %142 {strides = array<i32>} : memref<1x8x8x8xf32, #tpu.memory_space<vmem>>, vector<1x8x8x8xf32>,
    return
  }
  func.func @transform_0(%arg0: i32, %arg1: i32) -> (i32, i32, i32, i32) {
    %c0_i32 = arith.constant 0 : i32
    %c0_i32_0 = arith.constant 0 : i32
    %c0_i32_1 = arith.constant 0 : i32
    return %arg0, %arg1, %c0_i32, %c0_i32_0 : i32, i32, i32, i32
  }
  func.func @transform_1(%arg0: i32, %arg1: i32) -> (i32, i32, i32, i32) {
    %c1_i32 = arith.constant 1 : i32
    %0 = arith.addi %arg1, %c1_i32 : i32
    %c8_i32 = arith.constant 8 : i32
    %1 = arith.muli %0, %c8_i32 : i32
    %c0_i32 = arith.constant 0 : i32
    %c0_i32_0 = arith.constant 0 : i32
    %c0_i32_1 = arith.constant 0 : i32
    return %arg0, %1, %c0_i32, %c0_i32_0 : i32, i32, i32, i32
  }
  func.func @transform_2(%arg0: i32, %arg1: i32) -> (i32, i32, i32) {
    %c0_i32 = arith.constant 0 : i32
    %c0_i32_0 = arith.constant 0 : i32
    %c0_i32_1 = arith.constant 0 : i32
    %c0_i32_2 = arith.constant 0 : i32
    return %c0_i32, %c0_i32_0, %c0_i32_1 : i32, i32, i32
  }
  func.func @transform_3(%arg0: i32, %arg1: i32) -> (i32, i32) {
    %c0_i32 = arith.constant 0 : i32
    %c0_i32_0 = arith.constant 0 : i32
    %c0_i32_1 = arith.constant 0 : i32
    return %c0_i32, %c0_i32_0 : i32, i32
  }
  func.func @transform_4(%arg0: i32, %arg1: i32) -> (i32, i32, i32, i32) {
    %c0_i32 = arith.constant 0 : i32
    %c0_i32_0 = arith.constant 0 : i32
    %c0_i32_1 = arith.constant 0 : i32
    return %arg0, %c0_i32, %arg1, %c0_i32_0 : i32, i32, i32, i32
  }
}

</mosaic_0001>

<bundles_post_ra>
// kernel: tpu_custom_call.1
= control target key start
LH: loop header
LB: loop body
LE: loop exit
PB: predicated region body
PF: predicated region fallthrough
CT: control target
= control target key end

     0   :  { %9 = vsyncpa [#allocation3], 0  ;;  %s4758_s0 = inlined_call_operand.vmem [shape: f32[2,9,16,9], index: 0, kind: input, shape index: {}]   ;;  %s4759_s1 = inlined_call_operand.vmem [shape: f32[2,9,16,9], index: 1, kind: input, shape index: {}]   ;;  %s4760_s2 = inlined_call_operand.vmem [shape: f32[4,8,16], index: 2, kind: input, shape index: {}]   ;;  %s4761_s3 = inlined_call_operand.vmem [shape: f32[8,1], index: 3, kind: input, shape index: {}]   ;;  %s4762_s4 = inlined_call_operand.hbm [shape: f32[2,8,8,8], index: 4, kind: output, shape index: {}]  }
   0x1   :  { %11 = vsyncpa [#allocation3 + $0x1], 0  ;;  %s4136_s15 = smov 0   ;;  %s4138_s16 = smov 0  }
   0x2   :  { %s4140_s17 = smov 0   ;;  %s4142_s18 = smov 0  }
   0x3   :  { %s4144_s19 = smov 0   ;;  %s4146_s20 = smov 0  }
   0x4 LB: > { %s3574_s21 = sadd.s32 4294967295, %s4101_s20   ;;  %s3575_s22 = sadd.s32 4294967294, %s4101_s20   ;;  %s4101_s20 = sphi %s4146_s20, %s17_s20   ;;  %s4097_s19 = sphi %s4144_s19, %s4769_s19   ;;  %s4093_s18 = sphi %s4142_s18, %s4768_s18   ;;  %s4089_s17 = sphi %s4140_s17, %s4767_s17   ;;  %s4085_s16 = sphi %s4138_s16, %s4766_s16   ;;  %s4081_s15 = sphi %s4136_s15, %s4765_s15  }
   0x5   : > { %s29_s23 = sadd.s32 1, %s4097_s19  ;;  %s140_s24 = sadd.s32 1, %s4089_s17 }
   0x6   : > { %p31_p0 = scmp.ge.s32.totalorder %s29_s23, 2  ;;  %p150_p1 = scmp.ne.s32.totalorder %s4089_s17, %s4085_s16 }
   0x7   : > { %p151_p2 = scmp.eq.s32.totalorder %s3574_s21, 1  ;;  %p156_p3 = scmp.ne.s32.totalorder %s4085_s16, %s4081_s15 }
   0x8   : > { %s4771_s23 = smov (%p31_p0, %s29_s23), 0  ;;  %p157_p5 = scmp.eq.s32.totalorder %s3575_s22, 1 }
   0x9   : > { %p4176_p4 = por %p151_p2, %p150_p1  ;;  %s135_s26 = ssub.s32 %s4097_s19, %s4771_s23 }
   0xa   : > { %p3578_p6 = scmp.ge.s32.totalorder %s4101_s20, 1  ;;  %p138_p7 = scmp.eq.s32.totalorder %s135_s26, 0 }
   0xb   : > { %p4183_p8 = por %p157_p5, %p156_p3  ;;  %p221_p9 = scmp.lt.s32.totalorder %s4101_s20, 3 }
   0xc   : > { %s4189_s28 = scalar_select %p138_p7, %s4089_s17, %s140_s24  }
   0xd   : > { %p222_p10 = pnand %p3578_p6, %p221_p9 }
   0xe   : > { %p274_p11 = scmp.lt.s32.totalorder (!%p222_p10), %s4093_s18, 1  ;;  %s4105_s8 = smov (!%p222_p10), 127  }
   0xf   : > { %225 = sbr.rel (%p222_p10) target bundleno = 433 (0x1b1), region = 36  ;;  %s3638_s9 = sshll.u32 (!%p222_p10), %s4093_s18, 10 }
  0x14   : > { %v4103_v0 = vmov 0.0   ;;  %vm4104_vm0 = vmmov 0   ;;  %s4196_s29 = scalar_select %p274_p11, %s4093_s18, 1  ;;  %v4219_v5 = vld [vmem:[%s4760_s2] sm:$0xff]  ;;  %vm315_vm1 = vcmask 130048   ;;  %v4234_v8 = vld [vmem:[%s4760_s2 + $0x10] sm:$0xff] }
  0x15   : > { %3735 = vmatprep.subr.mxu0 %v4103_v0  ;;  %3739 = vmatprep.mubr.msk.f32.mxu0 %vm4104_vm0, %v4103_v0  ;;  %v309_v21 = vld [vmem:[%s4761_s3] sm:$0xff]  ;;  %v4106_v22 = vmov 0   ;;  %v4386_v25 = vld [vmem:[%s4760_s2 + $0x8] sm:$0xff]  ;;  %v4396_v28 = vld [vmem:[%s4760_s2 + $0x18] sm:$0xff]  ;;  %vm3385_vm2 = vcmask 1040384   ;;  %vm3394_vm3 = vcmask 1041408  }
  0x16   : > { %3742 = vmatprep.subr.mxu1 %v4103_v0  ;;  %3746 = vmatprep.mubr.msk.f32.mxu1 %vm4104_vm0, %v4103_v0  ;;  %s3959_s30 = smul.u32 144, %s4196_s29  ;;  %vm3403_vm4 = vcmask 1042432   ;;  %vm3412_vm5 = vcmask 1043456   ;;  %vm3421_vm6 = vcmask 1044480   ;;  %vm3430_vm7 = vcmask 1045504  }
  0x17   : > { %4024 = vset.pattern.permute.xlu0 %v4106_v22  ;;  %vm3439_vm8 = vcmask 1046528   ;;  %vm3448_vm9 = vcmask 64512  }
  0x18   : > { %s4207_s7 = scalar_lea.vmem %s4758_s0, %s3959_s30  ;;  %s3637_s13 = sadd.s32 128, %s3959_s30 }
  0x19   : > { %v311_v1 = vld [vmem:[%s4207_s7 + $0x8] sm:$0xff]  ;;  %v3586_v2 = vld [vmem:[%s4207_s7 + $0x18] sm:$0xff]  ;;  %v310_v3 = vld [vmem:[%s4207_s7] sm:$0xff]  ;;  %s299_s22 = scalar_lea.vmem %s4759_s1, %s3637_s13  ;;  %s4700_s13 = scalar_lea.hbm %s4762_s4, %s3638_s9 }
  0x1a   : > { %399 = vrot.lane.b32.xlu0 %v311_v1, %s4105_s8  ;;  %555 = vrot.lane.b32.xlu1 %v3586_v2, %s4105_s8  ;;  %v3585_v4 = vld [vmem:[%s4207_s7 + $0x10] sm:$0xff]  ;;  %v3592_v6 = vld [vmem:[%s4207_s7 + $0x28] sm:$0xff] }
  0x1b   : > { %3736 = vmatpush3.msra.mxu0 %v311_v1  ;;  %v3591_v7 = vld [vmem:[%s4207_s7 + $0x20] sm:$0xff]  ;;  %v3598_v9 = vld [vmem:[%s4207_s7 + $0x38] sm:$0xff]  ;;  %v3597_v10 = vld [vmem:[%s4207_s7 + $0x30] sm:$0xff] }
  0x1c   : > { %3737 = vmatprep.subr.mxu0 %v4103_v0  ;;  %v3604_v11 = vld [vmem:[%s4207_s7 + $0x48] sm:$0xff]  ;;  %v3603_v12 = vld [vmem:[%s4207_s7 + $0x40] sm:$0xff]  ;;  %v3610_v13 = vld [vmem:[%s4207_s7 + $0x58] sm:$0xff] }
  0x1d   : > { %3738 = vmatpush3.msra.mxu0 %v310_v3  ;;  %v3609_v14 = vld [vmem:[%s4207_s7 + $0x50] sm:$0xff]  ;;  %v4263_v15 = vld [vmem:[%s4207_s7 + $0x68] sm:$0xff]  ;;  %v4266_v16 = vld [vmem:[%s4207_s7 + $0x60] sm:$0xff] }
  0x1e   : > { %397 = vrot.lane.b32.xlu0 %v310_v3, %s4105_s8  ;;  %553 = vrot.lane.b32.xlu1 %v3585_v4, %s4105_s8  ;;  %v4281_v17 = vld [vmem:[%s4207_s7 + $0x78] sm:$0xff]  ;;  %v4284_v18 = vld [vmem:[%s4207_s7 + $0x70] sm:$0xff]  ;;  %s265_s7 = sand.u32 1, %s4085_s16  }
  0x1f   : > { %3740 = vmatmul.mubr.msk.f32.vlgmr.msra.gmra.mxu0 %vm315_vm1, %v4219_v5  ;;  %3749 = vmatprep.subr.mxu0 %v4103_v0  ;;  %v4298_v19 = vld [vmem:[%s299_s22 + $0x8] sm:$0xff]  ;;  %v4300_v20 = vld [vmem:[%s299_s22] sm:$0xff]  ;;  %s4713_s14 = scalar_lea.sflag [#allocation3], %s265_s7  ;;  %s4108_s22 = smov [#allocation2]  }
  0x20   : > { %3750 = vmatpush3.msra.mxu0 %v3586_v2  ;;  %3753 = vmatprep.mubr.msk.f32.mxu0 %vm4104_vm0, %v4103_v0  ;;  %s4029_s24 = sshll.u32 %s4108_s22, 4  ;;  %s4030_s24 = int_to_ptr.vmem [resolvable:$false] %s4029_s24 }
  0x21   : > { %3751 = vmatprep.subr.mxu0 %v4103_v0  ;;  %s4031_s26 = scalar_lea.vmem %s4030_s24, 2048 }
  0x22   : > { %853 = vrot.lane.b32.xlu0 %v3592_v6, %s4105_s8  ;;  %851 = vrot.lane.b32.xlu1 %v3591_v7, %s4105_s8 }
  0x23   : > { %3752 = vmatpush3.msra.mxu0 %v3585_v4 }
  0x24   : > { %3754 = vmatmul.mubr.msk.f32.vlgmr.msra.gmra.mxu0 %vm315_vm1, %v4234_v8  ;;  %3763 = vmatprep.subr.mxu0 %v4103_v0 }
  0x25   : > { %3764 = vmatpush3.msra.mxu0 %v3586_v2  ;;  %3767 = vmatprep.mubr.msk.f32.mxu0 %vm4104_vm0, %v4103_v0 }
  0x26   : > { %1148 = vrot.lane.b32.xlu0 %v3598_v9, %s4105_s8  ;;  %1146 = vrot.lane.b32.xlu1 %v3597_v10, %s4105_s8 }
  0x27   : > { %3765 = vmatprep.subr.mxu0 %v4103_v0 }
  0x28   : > { %3766 = vmatpush3.msra.mxu0 %v3585_v4 }
  0x29   : > { %3768 = vmatmul.mubr.msk.f32.vlgmr.msra.gmra.mxu0 %vm315_vm1, %v4219_v5  ;;  %3777 = vmatprep.subr.mxu0 %v4103_v0 }
  0x2a   : > { %1443 = vrot.lane.b32.xlu0 %v3604_v11, %s4105_s8  ;;  %1441 = vrot.lane.b32.xlu1 %v3603_v12, %s4105_s8 }
  0x2b   : > { %3778 = vmatpush3.msra.mxu0 %v3592_v6  ;;  %3781 = vmatprep.mubr.msk.f32.mxu0 %vm4104_vm0, %v4103_v0 }
  0x2c   : > { %3779 = vmatprep.subr.mxu0 %v4103_v0 }
  0x2d   : > { %3780 = vmatpush3.msra.mxu0 %v3591_v7 }
  0x2e   : > { %1738 = vrot.lane.b32.xlu0 %v3610_v13, %s4105_s8  ;;  %1736 = vrot.lane.b32.xlu1 %v3609_v14, %s4105_s8 }
  0x2f   : > { %3782 = vmatmul.mubr.msk.f32.vlgmr.msra.gmra.mxu0 %vm315_vm1, %v4234_v8  ;;  %3791 = vmatprep.subr.mxu0 %v4103_v0 }
  0x30   : > { %3792 = vmatpush3.msra.mxu0 %v3592_v6  ;;  %3795 = vmatprep.mubr.msk.f32.mxu0 %vm4104_vm0, %v4103_v0 }
  0x31   : > { %3793 = vmatprep.subr.mxu0 %v4103_v0 }
  0x32   : > { %2033 = vrot.lane.b32.xlu0 %v4263_v15, %s4105_s8  ;;  %2031 = vrot.lane.b32.xlu1 %v4266_v16, %s4105_s8 }
  0x33   : > { %3794 = vmatpush3.msra.mxu0 %v3591_v7 }
  0x34   : > { %3796 = vmatmul.mubr.msk.f32.vlgmr.msra.gmra.mxu0 %vm315_vm1, %v4219_v5  ;;  %3805 = vmatprep.subr.mxu0 %v4103_v0 }
  0x35   : > { %3806 = vmatpush3.msra.mxu0 %v3598_v9  ;;  %3809 = vmatprep.mubr.msk.f32.mxu0 %vm4104_vm0, %v4103_v0 }
  0x36   : > { %2328 = vrot.lane.b32.xlu0 %v4281_v17, %s4105_s8  ;;  %2326 = vrot.lane.b32.xlu1 %v4284_v18, %s4105_s8 }
  0x37   : > { %3807 = vmatprep.subr.mxu0 %v4103_v0 }
  0x38   : > { %3808 = vmatpush3.msra.mxu0 %v3597_v10 }
  0x39   : > { %3810 = vmatmul.mubr.msk.f32.vlgmr.msra.gmra.mxu0 %vm315_vm1, %v4234_v8  ;;  %3819 = vmatprep.subr.mxu0 %v4103_v0 }
  0x3a   : > { %2622 = vrot.lane.b32.xlu0 %v4298_v19, %s4105_s8  ;;  %2620 = vrot.lane.b32.xlu1 %v4300_v20, %s4105_s8  ;;  %s3579_s8 = sshll.u32 %s265_s7, 6 }
  0x3b   : > { %3820 = vmatpush3.msra.mxu0 %v3598_v9  ;;  %3823 = vmatprep.mubr.msk.f32.mxu0 %vm4104_vm0, %v4103_v0  ;;  %s267_s10 = scalar_lea.vmem [#allocation2], %s3579_s8 }
  0x3c   : > { %3821 = vmatprep.subr.mxu0 %v4103_v0  ;;  %s3472_s11 = sshll.u32 %s267_s10, 4  ;;  %s4702_s11 = int_to_ptr.vmem [resolvable:$true] %s3472_s11 }
  0x3d   : > { %3822 = vmatpush3.msra.mxu0 %v3597_v10  ;;  %s4025_s21 = scalar_lea.vmem %s4702_s11, 1024  ;;  %p4032_p1 = scmp.lt.s32.totalorder %s4702_s11, %s4030_s24 }
  0x3e   : > { %3824 = vmatmul.mubr.msk.f32.vlgmr.msra.gmra.mxu0 %vm315_vm1, %v4219_v5  ;;  %3833 = vmatprep.subr.mxu0 %v4103_v0  ;;  %p4026_p12 = scmp.ne.s32.totalorder %s4702_s11, %s4025_s21  ;;  %p4033_p2 = scmp.lt.s32.totalorder %s4031_s26, %s4025_s21 }
  0x3f   : > { %3834 = vmatpush3.msra.mxu0 %v3604_v11  ;;  %3837 = vmatprep.mubr.msk.f32.mxu0 %vm4104_vm0, %v4103_v0 }
  0x40   : > { %3835 = vmatprep.subr.mxu0 %v4103_v0  ;;  %391 = vperm.xlu0 %4024, %v309_v21   ;;  %p4027_p13 = pnand %p4026_p12, %p4176_p4  ;;  %p4034_p3 = por %p4033_p2, %p4032_p1 }
  0x41   : > { %3836 = vmatpush3.msra.mxu0 %v3603_v12 }
  0x42   : > { %3838 = vmatmul.mubr.msk.f32.vlgmr.msra.gmra.mxu0 %vm315_vm1, %v4234_v8  ;;  %3847 = vmatprep.subr.mxu0 %v4103_v0  ;;  %p4028_p0 = pneg %p4027_p13 }
  0x43   : > { %3848 = vmatpush3.msra.mxu0 %v3604_v11  ;;  %3851 = vmatprep.mubr.msk.f32.mxu0 %vm4104_vm0, %v4103_v0 }
  0x44   : > { %3849 = vmatprep.subr.mxu0 %v4103_v0  ;;  %p4035_p5 = pnand %p4034_p3, %p4028_p0 }
  0x45   : > { %3850 = vmatpush3.msra.mxu0 %v3603_v12 }
  0x46   : > { %3852 = vmatmul.mubr.msk.f32.vlgmr.msra.gmra.mxu0 %vm315_vm1, %v4219_v5  ;;  %3861 = vmatprep.subr.mxu0 %v4103_v0 }
  0x47   : > { %3862 = vmatpush3.msra.mxu0 %v3610_v13  ;;  %3865 = vmatprep.mubr.msk.f32.mxu0 %vm4104_vm0, %v4103_v0 }
  0x48   : > { %3863 = vmatprep.subr.mxu0 %v4103_v0 }
  0x49   : > { %3864 = vmatpush3.msra.mxu0 %v3609_v14 }
  0x4a   : > { %3866 = vmatmul.mubr.msk.f32.vlgmr.msra.gmra.mxu0 %vm315_vm1, %v4234_v8  ;;  %3875 = vmatprep.subr.mxu0 %v4103_v0 }
  0x4b   : > { %3876 = vmatpush3.msra.mxu0 %v3610_v13  ;;  %3879 = vmatprep.mubr.msk.f32.mxu0 %vm4104_vm0, %v4103_v0  ;;  %v4107_v13 = vmov 1966171168  }
  0x4c   : > { %3877 = vmatprep.subr.mxu0 %v4103_v0 }
  0x4d   : > { %3878 = vmatpush3.msra.mxu0 %v3609_v14  ;;  %v2700_v14 = vunpack.c.l.s4 %v4107_v13 }
  0x4e   : > { %3880 = vmatmul.mubr.msk.f32.vlgmr.msra.gmra.mxu0 %vm315_vm1, %v4219_v5  ;;  %3889 = vmatprep.subr.mxu0 %v4103_v0 }
  0x4f   : > { %3890 = vmatpush3.msra.mxu0 %v4263_v15  ;;  %3893 = vmatprep.mubr.msk.f32.mxu0 %vm4104_vm0, %v4103_v0 }
  0x50   : > { %3891 = vmatprep.subr.mxu0 %v4103_v0 }
  0x51   : > { %3892 = vmatpush3.msra.mxu0 %v4266_v16 }
  0x52   : > { %3894 = vmatmul.mubr.msk.f32.vlgmr.msra.gmra.mxu0 %vm315_vm1, %v4234_v8  ;;  %3903 = vmatprep.subr.mxu0 %v4103_v0 }
  0x53   : > { %3904 = vmatpush3.msra.mxu0 %v4263_v15  ;;  %3907 = vmatprep.mubr.msk.f32.mxu0 %vm4104_vm0, %v4103_v0  ;;  %v2702_v15 = vlaneseq }
  0x54   : > { %3905 = vmatprep.subr.mxu0 %v4103_v0 }
  0x55   : > { %3906 = vmatpush3.msra.mxu0 %v4266_v16 }
  0x56   : > { %3908 = vmatmul.mubr.msk.f32.vlgmr.msra.gmra.mxu0 %vm315_vm1, %v4219_v5  ;;  %3917 = vmatprep.subr.mxu0 %v4103_v0 }
  0x57   : > { %3918 = vmatpush3.msra.mxu0 %v4281_v17  ;;  %3921 = vmatprep.mubr.msk.f32.mxu0 %vm4104_vm0, %v4103_v0 }
  0x58   : > { %3919 = vmatprep.subr.mxu0 %v4103_v0 }
  0x59   : > { %3920 = vmatpush3.msra.mxu0 %v4284_v18 }
  0x5a   : > { %3922 = vmatmul.mubr.msk.f32.vlgmr.msra.gmra.mxu0 %vm315_vm1, %v4234_v8  ;;  %3931 = vmatprep.subr.mxu0 %v4103_v0 }
  0x5b   : > { %3932 = vmatpush3.msra.mxu0 %v4281_v17  ;;  %3935 = vmatprep.mubr.msk.f32.mxu0 %vm4104_vm0, %v4103_v0 }
  0x5c   : > { %3933 = vmatprep.subr.mxu0 %v4103_v0 }
  0x5d   : > { %3934 = vmatpush3.msra.mxu0 %v4284_v18  ;;  %v2701_v18 = vunpack.c.0.s8 %v2700_v14 }
  0x5e   : > { %3936 = vmatmul.mubr.msk.f32.vlgmr.msra.gmra.mxu0 %vm315_vm1, %v4219_v5  ;;  %3945 = vmatprep.subr.mxu0 %v4103_v0 }
  0x5f   : > { %3946 = vmatpush3.msra.mxu0 %v4298_v19  ;;  %3949 = vmatprep.mubr.msk.f32.mxu0 %vm4104_vm0, %v4103_v0  ;;  %v2703_v19 = vshrl.u32 %v2702_v15, 7 }
  0x60   : > { %3947 = vmatprep.subr.mxu0 %v4103_v0 }
  0x61   : > { %3948 = vmatpush3.msra.mxu0 %v4300_v20 }
  0x62   : > { %3950 = vmatmul.mubr.msk.f32.vlgmr.msra.gmra.mxu0 %vm315_vm1, %v4234_v8 }
  0x8c   : > { %v400_v23 = vpop.permute.xlu0 %399  ;;  %v556_v24 = vpop.permute.xlu1 %555 }
  0x8d   : > { %3743 = vmatpush3.msra.mxu1 %v400_v23 }
  0x8e   : > { %3744 = vmatprep.subr.mxu1 %v4103_v0 }
  0x90   : > { %v398_v26 = vpop.permute.xlu0 %397  ;;  %v554_v27 = vpop.permute.xlu1 %553 }
  0x91   : > { %3745 = vmatpush3.msra.mxu1 %v398_v26 }
  0x92   : > { %3747 = vmatmul.mubr.msk.f32.vlgmr.msra.gmra.mxu1 %vm315_vm1, %v4386_v25  ;;  %3756 = vmatprep.subr.mxu1 %v4103_v0 }
  0x93   : > { %3757 = vmatpush3.msra.mxu1 %v556_v24  ;;  %3760 = vmatprep.mubr.msk.f32.mxu1 %vm4104_vm0, %v4103_v0 }
  0x94   : > { %3758 = vmatprep.subr.mxu1 %v4103_v0  ;;  %v854_v29 = vpop.permute.xlu0 %853  ;;  %v852_v30 = vpop.permute.xlu1 %851 }
  0x95   : > { %3759 = vmatpush3.msra.mxu1 %v554_v27 }
  0x96   : > { %3761 = vmatmul.mubr.msk.f32.vlgmr.msra.gmra.mxu1 %vm315_vm1, %v4396_v28  ;;  %3770 = vmatprep.subr.mxu1 %v4103_v0 }
  0x97   : > { %3771 = vmatpush3.msra.mxu1 %v556_v24  ;;  %3774 = vmatprep.mubr.msk.f32.mxu1 %vm4104_vm0, %v4103_v0 }
  0x98   : > { %3772 = vmatprep.subr.mxu1 %v4103_v0  ;;  %v1149_v31 = vpop.permute.xlu0 %1148  ;;  %v1147_v32 = vpop.permute.xlu1 %1146 }
  0x99   : > { %3773 = vmatpush3.msra.mxu1 %v554_v27 }
  0x9a   : > { %3775 = vmatmul.mubr.msk.f32.vlgmr.msra.gmra.mxu1 %vm315_vm1, %v4386_v25  ;;  %3784 = vmatprep.subr.mxu1 %v4103_v0 }
  0x9b   : > { %3785 = vmatpush3.msra.mxu1 %v854_v29  ;;  %3788 = vmatprep.mubr.msk.f32.mxu1 %vm4104_vm0, %v4103_v0 }
  0x9c   : > { %3786 = vmatprep.subr.mxu1 %v4103_v0  ;;  %v1444_v33 = vpop.permute.xlu0 %1443  ;;  %v1442_v34 = vpop.permute.xlu1 %1441 }
  0x9d   : > { %3787 = vmatpush3.msra.mxu1 %v852_v30 }
  0x9e   : > { %3789 = vmatmul.mubr.msk.f32.vlgmr.msra.gmra.mxu1 %vm315_vm1, %v4396_v28  ;;  %3798 = vmatprep.subr.mxu1 %v4103_v0 }
  0x9f   : > { %3799 = vmatpush3.msra.mxu1 %v854_v29  ;;  %3802 = vmatprep.mubr.msk.f32.mxu1 %vm4104_vm0, %v4103_v0 }
  0xa0   : > { %3800 = vmatprep.subr.mxu1 %v4103_v0  ;;  %v1739_v35 = vpop.permute.xlu0 %1738  ;;  %v1737_v36 = vpop.permute.xlu1 %1736 }
  0xa1   : > { %3801 = vmatpush3.msra.mxu1 %v852_v30 }
  0xa2   : > { %3803 = vmatmul.mubr.msk.f32.vlgmr.msra.gmra.mxu1 %vm315_vm1, %v4386_v25  ;;  %3812 = vmatprep.subr.mxu1 %v4103_v0 }
  0xa3   : > { %3813 = vmatpush3.msra.mxu1 %v1149_v31  ;;  %3816 = vmatprep.mubr.msk.f32.mxu1 %vm4104_vm0, %v4103_v0 }
  0xa4   : > { %3814 = vmatprep.subr.mxu1 %v4103_v0  ;;  %v2034_v37 = vpop.permute.xlu0 %2033  ;;  %v2032_v38 = vpop.permute.xlu1 %2031 }
  0xa5   : > { %3815 = vmatpush3.msra.mxu1 %v1147_v32 }
  0xa6   : > { %3817 = vmatmul.mubr.msk.f32.vlgmr.msra.gmra.mxu1 %vm315_vm1, %v4396_v28  ;;  %3826 = vmatprep.subr.mxu1 %v4103_v0 }
  0xa7   : > { %3827 = vmatpush3.msra.mxu1 %v1149_v31  ;;  %3830 = vmatprep.mubr.msk.f32.mxu1 %vm4104_vm0, %v4103_v0 }
  0xa8   : > { %3828 = vmatprep.subr.mxu1 %v4103_v0  ;;  %v2329_v39 = vpop.permute.xlu0 %2328  ;;  %v2327_v40 = vpop.permute.xlu1 %2326 }
  0xa9   : > { %3829 = vmatpush3.msra.mxu1 %v1147_v32 }
  0xaa   : > { %3831 = vmatmul.mubr.msk.f32.vlgmr.msra.gmra.mxu1 %vm315_vm1, %v4386_v25  ;;  %3840 = vmatprep.subr.mxu1 %v4103_v0 }
  0xab   : > { %3841 = vmatpush3.msra.mxu1 %v1444_v33  ;;  %3844 = vmatprep.mubr.msk.f32.mxu1 %vm4104_vm0, %v4103_v0 }
  0xac   : > { %3842 = vmatprep.subr.mxu1 %v4103_v0  ;;  %v2623_v41 = vpop.permute.xlu0 %2622  ;;  %v2621_v42 = vpop.permute.xlu1 %2620 }
  0xad   : > { %3843 = vmatpush3.msra.mxu1 %v1442_v34 }
  0xae   : > { %3845 = vmatmul.mubr.msk.f32.vlgmr.msra.gmra.mxu1 %vm315_vm1, %v4396_v28  ;;  %3854 = vmatprep.subr.mxu1 %v4103_v0 }
  0xaf   : > { %3855 = vmatpush3.msra.mxu1 %v1444_v33  ;;  %3858 = vmatprep.mubr.msk.f32.mxu1 %vm4104_vm0, %v4103_v0 }
  0xb0   : > { %3856 = vmatprep.subr.mxu1 %v4103_v0 }
  0xb1   : > { %3857 = vmatpush3.msra.mxu1 %v1442_v34 }
  0xb2   : > { %3859 = vmatmul.mubr.msk.f32.vlgmr.msra.gmra.mxu1 %vm315_vm1, %v4386_v25  ;;  %3868 = vmatprep.subr.mxu1 %v4103_v0 }
  0xb3   : > { %3869 = vmatpush3.msra.mxu1 %v1739_v35  ;;  %3872 = vmatprep.mubr.msk.f32.mxu1 %vm4104_vm0, %v4103_v0 }
  0xb4   : > { %3870 = vmatprep.subr.mxu1 %v4103_v0 }
  0xb5   : > { %3871 = vmatpush3.msra.mxu1 %v1737_v36 }
  0xb6   : > { %3873 = vmatmul.mubr.msk.f32.vlgmr.msra.gmra.mxu1 %vm315_vm1, %v4396_v28  ;;  %3882 = vmatprep.subr.mxu1 %v4103_v0 }
  0xb7   : > { %3883 = vmatpush3.msra.mxu1 %v1739_v35  ;;  %3886 = vmatprep.mubr.msk.f32.mxu1 %vm4104_vm0, %v4103_v0 }
  0xb8   : > { %3884 = vmatprep.subr.mxu1 %v4103_v0 }
  0xb9   : > { %3885 = vmatpush3.msra.mxu1 %v1737_v36 }
  0xba   : > { %3887 = vmatmul.mubr.msk.f32.vlgmr.msra.gmra.mxu1 %vm315_vm1, %v4386_v25  ;;  %3896 = vmatprep.subr.mxu1 %v4103_v0 }
  0xbb   : > { %3897 = vmatpush3.msra.mxu1 %v2034_v37  ;;  %3900 = vmatprep.mubr.msk.f32.mxu1 %vm4104_vm0, %v4103_v0  ;;  %v4507_v11 = vpop.permute.xlu0 %391 }
  0xbc   : > { %3898 = vmatprep.subr.mxu1 %v4103_v0 }
  0xbd   : > { %3899 = vmatpush3.msra.mxu1 %v2032_v38 }
  0xbe   : > { %3901 = vmatmul.mubr.msk.f32.vlgmr.msra.gmra.mxu1 %vm315_vm1, %v4396_v28  ;;  %3910 = vmatprep.subr.mxu1 %v4103_v0 }
  0xbf   : > { %3911 = vmatpush3.msra.mxu1 %v2034_v37  ;;  %3914 = vmatprep.mubr.msk.f32.mxu1 %vm4104_vm0, %v4103_v0 }
  0xc0   : > { %3912 = vmatprep.subr.mxu1 %v4103_v0 }
  0xc1   : > { %3913 = vmatpush3.msra.mxu1 %v2032_v38 }
  0xc2   : > { %3915 = vmatmul.mubr.msk.f32.vlgmr.msra.gmra.mxu1 %vm315_vm1, %v4386_v25  ;;  %3924 = vmatprep.subr.mxu1 %v4103_v0 }
  0xc3   : > { %3925 = vmatpush3.msra.mxu1 %v2329_v39  ;;  %3928 = vmatprep.mubr.msk.f32.mxu1 %vm4104_vm0, %v4103_v0 }
  0xc4   : > { %3926 = vmatprep.subr.mxu1 %v4103_v0 }
  0xc5   : > { %3927 = vmatpush3.msra.mxu1 %v2327_v40 }
  0xc6   : > { %3929 = vmatmul.mubr.msk.f32.vlgmr.msra.gmra.mxu1 %vm315_vm1, %v4396_v28  ;;  %3938 = vmatprep.subr.mxu1 %v4103_v0 }
  0xc7   : > { %3939 = vmatpush3.msra.mxu1 %v2329_v39  ;;  %3942 = vmatprep.mubr.msk.f32.mxu1 %vm4104_vm0, %v4103_v0 }
  0xc8   : > { %3940 = vmatprep.subr.mxu1 %v4103_v0 }
  0xc9   : > { %3941 = vmatpush3.msra.mxu1 %v2327_v40 }
  0xca   : > { %3943 = vmatmul.mubr.msk.f32.vlgmr.msra.gmra.mxu1 %vm315_vm1, %v4386_v25  ;;  %3952 = vmatprep.subr.mxu1 %v4103_v0  ;;  %v4511_v25 = vsub.s32 %v2701_v18, %v2703_v19 }
  0xcb   : > { %3953 = vmatpush3.msra.mxu1 %v2623_v41  ;;  %3956 = vmatprep.mubr.msk.f32.mxu1 %vm4104_vm0, %v4103_v0 }
  0xcc   : > { %3954 = vmatprep.subr.mxu1 %v4103_v0 }
  0xcd   : > { %3955 = vmatpush3.msra.mxu1 %v2621_v42 }
  0xce   : > { %3957 = vmatmul.mubr.msk.f32.vlgmr.msra.gmra.mxu1 %vm315_vm1, %v4396_v28 }
  0xdf   : > { %v385_v43 = vpop.f32.mrf.mxu0 }
  0xe0   : > { %v394_v12 = vadd.f32 %v4507_v11, %v385_v43 }
  0xe1   : > { %v3741_v44 = vpop.f32.mrf.mxu0 }
  0xe4   : > { %v546_v45 = vpop.f32.mrf.mxu0 }
  0xe6   : > { %v3755_v46 = vpop.f32.mrf.mxu0 }
  0xe9   : > { %v702_v47 = vpop.f32.mrf.mxu0 }
  0xea   : > { %v706_v23 = vadd.f32 %v702_v47, %v4507_v11  ;;  %v4521_v47 = vsub.s32 0, %v2703_v19 }
  0xeb   : > { %v3769_v48 = vpop.f32.mrf.mxu0 }
  0xef   : > { %v844_v49 = vpop.f32.mrf.mxu0 }
  0xf1   : > { %v3783_v50 = vpop.f32.mrf.mxu0 }
  0xf4   : > { %v997_v51 = vpop.f32.mrf.mxu0 }
  0xf5   : > { %v1001_v37 = vadd.f32 %v997_v51, %v4507_v11 }
  0xf6   : > { %v3797_v52 = vpop.f32.mrf.mxu0 }
  0xf9   : > { %v4485_v53 = vpop.f32.mrf.mxu0 }
  0xfb   : > { %v3811_v54 = vpop.f32.mrf.mxu0 }
  0xfe   : > { %v4487_v55 = vpop.f32.mrf.mxu0 }
 0x100   : > { %v3825_v56 = vpop.f32.mrf.mxu0 }
 0x102   : > { %v4489_v57 = vpop.f32.mrf.mxu0 }
 0x104   : > { %v3839_v58 = vpop.f32.mrf.mxu0 }
 0x105   : > { %v1296_v58 = vadd.f32 %v4487_v55, %v4507_v11 }
 0x106   : > { %v4491_v59 = vpop.f32.mrf.mxu0 }
 0x108   : > { %v3853_v60 = vpop.f32.mrf.mxu0 }
 0x10a   : > { %v4493_v61 = vpop.f32.mrf.mxu0 }
 0x10c   : > { %v3867_v62 = vpop.f32.mrf.mxu0 }
 0x10e   : > { %v4495_v63 = vpop.f32.mrf.mxu0 }
 0x110   : > { %v3881_v0 = vpop.f32.mrf.mxu0 }
 0x112   : > { %v4497_v1 = vpop.f32.mrf.mxu0 }
 0x114   : > { %v3895_v2 = vpop.f32.mrf.mxu0 }
 0x116   : > { %v4499_v3 = vpop.f32.mrf.mxu0 }
 0x118   : > { %v3909_v4 = vpop.f32.mrf.mxu0 }
 0x11a   : > { %v4501_v5 = vpop.f32.mrf.mxu0 }
 0x11c   : > { %v3923_v6 = vpop.f32.mrf.mxu0 }
 0x11e   : > { %v4503_v7 = vpop.f32.mrf.mxu0 }
 0x120   : > { %v3937_v8 = vpop.f32.mrf.mxu0 }
 0x122   : > { %v4505_v9 = vpop.f32.mrf.mxu0 }
 0x124   : > { %v3951_v10 = vpop.f32.mrf.mxu0 }
 0x152   : > { %v472_v16 = vpop.f32.mrf.mxu1 }
 0x153   : > { %v476_v17 = vadd.f32 %v472_v16, %v394_v12 }
 0x154   : > { %v3748_v20 = vpop.f32.mrf.mxu1 }
 0x155   : > { %v550_v21 = vadd.f32 %v546_v45, %v476_v17 }
 0x156   : > { %v628_v22 = vpop.f32.mrf.mxu1 }
 0x157   : > { %v632_v24 = vadd.f32 %v628_v22, %v550_v21 }
 0x158   : > { %v3762_v26 = vpop.f32.mrf.mxu1 }
 0x159   : > { %v2698_v27 = vcombine.high %v632_v24, %v632_v24  ;;  %v2705_v29 = vrot.slane %v632_v24, %v4511_v25 }
 0x15a   : > { %v773_v28 = vpop.f32.mrf.mxu1 }
 0x15b   : > { %v2712_v30 = vrot.slane %v2698_v27, %v4511_v25  ;;  %v777_v31 = vadd.f32 %v773_v28, %v706_v23  ;;  %v2713_v35 = vcombine.high %v2705_v29, %v2705_v29  ;;  %v2721_v40 = vrot.slane %v2705_v29, %v4511_v25 }
 0x15c   : > { %v3776_v32 = vpop.f32.mrf.mxu1 }
 0x15d   : > { %v848_v33 = vadd.f32 %v844_v49, %v777_v31  ;;  %v2714_v36 = vcombine.high %v2712_v30, %v2712_v30  ;;  %v2728_v41 = vrot.slane %v2712_v30, %v4511_v25  ;;  %v2735_v45 = vrot.slane %v2713_v35, %v4511_v25 }
 0x15e   : > { %v923_v34 = vpop.f32.mrf.mxu1  ;;  %v2743_v54 = vcombine.high %v2721_v40, %v2721_v40 }
 0x15f   : > { %v927_v38 = vadd.f32 %v923_v34, %v848_v33  ;;  %v2742_v46 = vrot.slane %v2714_v36, %v4511_v25  ;;  %v2744_v56 = vcombine.high %v2728_v41, %v2728_v41  ;;  %v2745_v8 = vcombine.high %v2735_v45, %v2735_v45 }
 0x160   : > { %v3790_v39 = vpop.f32.mrf.mxu1 }
 0x161   : > { %v2756_v42 = vcombine.high %v927_v38, %v927_v38  ;;  %v2763_v43 = vrot.slane %v927_v38, %v4511_v25  ;;  %v2746_v10 = vcombine.high %v2742_v46, %v2742_v46 }
 0x162   : > { %v1068_v44 = vpop.f32.mrf.mxu1 }
 0x163   : > { %v1072_v48 = vadd.f32 %v1068_v44, %v1001_v37  ;;  %v2770_v49 = vrot.slane %v2756_v42, %v4511_v25  ;;  %v2771_v50 = vcombine.high %v2763_v43, %v2763_v43  ;;  %v2779_v51 = vrot.slane %v2763_v43, %v4511_v25 }
 0x164   : > { %v3804_v52 = vpop.f32.mrf.mxu1 }
 0x165   : > { %v1143_v60 = vadd.f32 %v4485_v53, %v1072_v48  ;;  %v2772_v62 = vcombine.high %v2770_v49, %v2770_v49  ;;  %v2786_v0 = vrot.slane %v2770_v49, %v4511_v25  ;;  %v2793_v2 = vrot.slane %v2771_v50, %v4511_v25 }
 0x166   : > { %v2801_v4 = vcombine.high %v2779_v51, %v2779_v51  ;;  %v1218_v6 = vpop.f32.mrf.mxu1  ;;  %v3108_v12 = vrot.slane %v2779_v51, %v4521_v47  ;;  %v1591_v48 = vadd.f32 %v4491_v59, %v4507_v11 }
 0x167   : > { %v1222_v13 = vadd.f32 %v1218_v6, %v1143_v60  ;;  %v2800_v14 = vrot.slane %v2772_v62, %v4511_v25  ;;  %v2802_v15 = vcombine.high %v2786_v0, %v2786_v0  ;;  %v2803_v16 = vcombine.high %v2793_v2, %v2793_v2 }
 0x168   : > { %v3112_v55 = vrot.slane %v2793_v2, %v4521_v47  ;;  %v3818_v17 = vpop.f32.mrf.mxu1  ;;  %v3116_v53 = vrot.slane %v2801_v4, %v4521_v47  ;;  %v3124_v18 = vrot.slane %v2786_v0, %v4521_v47  ;;  %v3386_v19 = vsel %vm3385_vm2, %v2721_v40, %v3108_v12 }
 0x169   : > { %v2806_v20 = vcombine.high %v1222_v13, %v1222_v13  ;;  %v2804_v21 = vcombine.high %v2800_v14, %v2800_v14  ;;  %v3120_v22 = vrot.slane %v2803_v16, %v4521_v47  ;;  %v3128_v23 = vrot.slane %v2800_v14, %v4521_v47 }
 0x16a   : > { %v3132_v24 = vrot.slane %v2802_v15, %v4521_v47  ;;  %v1363_v26 = vpop.f32.mrf.mxu1  ;;  %v3387_v27 = vsel %vm3385_vm2, %v2735_v45, %v3112_v55  ;;  %v3388_v28 = vsel %vm3385_vm2, %v2743_v54, %v3116_v53  ;;  %v3390_v29 = vsel %vm3385_vm2, %v2728_v41, %v3124_v18 }
 0x16b   : > { %v2813_v30 = vrot.slane %v1222_v13, %v4511_v25  ;;  %v3136_v31 = vrot.slane %v2804_v21, %v4521_v47  ;;  %v3389_v32 = vsel %vm3385_vm2, %v2745_v8, %v3120_v22  ;;  %v3391_v33 = vsel %vm3385_vm2, %v2742_v46, %v3128_v23 }
 0x16c   : > { %v3392_v34 = vsel %vm3385_vm2, %v2744_v56, %v3132_v24  ;;  %v3832_v35 = vpop.f32.mrf.mxu1  ;;  %v2820_v36 = vrot.slane %v2806_v20, %v4511_v25  ;;  %v1367_v39 = vadd.f32 %v1363_v26, %v1296_v58  ;;  %v1886_v22 = vadd.f32 %v4495_v63, %v4507_v11 }
 0x16d   : > { %v2821_v37 = vcombine.high %v2813_v30, %v2813_v30  ;;  %v2829_v38 = vrot.slane %v2813_v30, %v4511_v25  ;;  %v3393_v40 = vsel %vm3385_vm2, %v2746_v10, %v3136_v31 }
 0x16e   : > { %v1513_v41 = vpop.f32.mrf.mxu1  ;;  %v2822_v42 = vcombine.high %v2820_v36, %v2820_v36  ;;  %v2836_v43 = vrot.slane %v2820_v36, %v4511_v25  ;;  %v1438_v49 = vadd.f32 %v4489_v57, %v1367_v39 }
 0x16f   : > { %v2843_v44 = vrot.slane %v2821_v37, %v4511_v25  ;;  %v2851_v45 = vcombine.high %v2829_v38, %v2829_v38  ;;  %v3148_v46 = vrot.slane %v2829_v38, %v4521_v47 }
 0x170   : > { %v3846_v50 = vpop.f32.mrf.mxu1  ;;  %v2850_v51 = vrot.slane %v2822_v42, %v4511_v25  ;;  %v2852_v52 = vcombine.high %v2836_v43, %v2836_v43  ;;  %v3164_v60 = vrot.slane %v2836_v43, %v4521_v47  ;;  %v1517_v0 = vadd.f32 %v1513_v41, %v1438_v49 }
 0x171   : > { %v2853_v54 = vcombine.high %v2843_v44, %v2843_v44  ;;  %v3152_v56 = vrot.slane %v2843_v44, %v4521_v47  ;;  %v3156_v58 = vrot.slane %v2851_v45, %v4521_v47  ;;  %v3395_v62 = vsel %vm3394_vm3, %v3386_v19, %v3148_v46 }
 0x172   : > { %v1658_v2 = vpop.f32.mrf.mxu1  ;;  %v2854_v4 = vcombine.high %v2850_v51, %v2850_v51  ;;  %v3168_v57 = vrot.slane %v2850_v51, %v4521_v47  ;;  %v3172_v6 = vrot.slane %v2852_v52, %v4521_v47  ;;  %v3399_v12 = vsel %vm3394_vm3, %v3390_v29, %v3164_v60 }
 0x173   : > { %v3160_v59 = vrot.slane %v2853_v54, %v4521_v47  ;;  %v3396_v8 = vsel %vm3394_vm3, %v3387_v27, %v3152_v56  ;;  %v3397_v10 = vsel %vm3394_vm3, %v3388_v28, %v3156_v58  ;;  %v2856_v13 = vcombine.high %v1517_v0, %v1517_v0 }
 0x174   : > { %v3860_v14 = vpop.f32.mrf.mxu1  ;;  %v3176_v15 = vrot.slane %v2854_v4, %v4521_v47  ;;  %v3400_v55 = vsel %vm3394_vm3, %v3391_v33, %v3168_v57  ;;  %v3401_v17 = vsel %vm3394_vm3, %v3392_v34, %v3172_v6  ;;  %v2863_v53 = vrot.slane %v1517_v0, %v4511_v25 }
 0x175   : > { %v3398_v16 = vsel %vm3394_vm3, %v3389_v32, %v3160_v59  ;;  %v2870_v18 = vrot.slane %v2856_v13, %v4511_v25  ;;  %v1662_v19 = vadd.f32 %v1658_v2, %v1591_v48  ;;  %v2181_v0 = vadd.f32 %v4499_v3, %v4507_v11 }
 0x176   : > { %v1808_v20 = vpop.f32.mrf.mxu1  ;;  %v3402_v21 = vsel %vm3394_vm3, %v3393_v40, %v3176_v15  ;;  %v2871_v23 = vcombine.high %v2863_v53, %v2863_v53  ;;  %v2879_v26 = vrot.slane %v2863_v53, %v4511_v25 }
 0x177   : > { %v2872_v24 = vcombine.high %v2870_v18, %v2870_v18  ;;  %v2886_v27 = vrot.slane %v2870_v18, %v4511_v25  ;;  %v1733_v29 = vadd.f32 %v4493_v61, %v1662_v19 }
 0x178   : > { %v3874_v28 = vpop.f32.mrf.mxu1  ;;  %v2893_v30 = vrot.slane %v2871_v23, %v4511_v25  ;;  %v2901_v32 = vcombine.high %v2879_v26, %v2879_v26  ;;  %v3188_v35 = vrot.slane %v2879_v26, %v4521_v47 }
 0x179   : > { %v2900_v31 = vrot.slane %v2872_v24, %v4511_v25  ;;  %v2902_v33 = vcombine.high %v2886_v27, %v2886_v27  ;;  %v3204_v63 = vrot.slane %v2886_v27, %v4521_v47  ;;  %v1812_v36 = vadd.f32 %v1808_v20, %v1733_v29 }
 0x17a   : > { %v1953_v34 = vpop.f32.mrf.mxu1  ;;  %v2903_v38 = vcombine.high %v2893_v30, %v2893_v30  ;;  %v3192_v40 = vrot.slane %v2893_v30, %v4521_v47  ;;  %v3196_v41 = vrot.slane %v2901_v32, %v4521_v47  ;;  %v3404_v44 = vsel %vm3403_vm4, %v3395_v62, %v3188_v35 }
 0x17b   : > { %v1957_v37 = vadd.f32 %v1953_v34, %v1886_v22  ;;  %v2904_v39 = vcombine.high %v2900_v31, %v2900_v31  ;;  %v3208_v42 = vrot.slane %v2900_v31, %v4521_v47  ;;  %v3212_v43 = vrot.slane %v2902_v33, %v4521_v47 }
 0x17c   : > { %v3888_v61 = vpop.f32.mrf.mxu1  ;;  %v3408_v45 = vsel %vm3403_vm4, %v3399_v12, %v3204_v63  ;;  %v3200_v46 = vrot.slane %v2903_v38, %v4521_v47  ;;  %v3405_v49 = vsel %vm3403_vm4, %v3396_v8, %v3192_v40  ;;  %v3406_v50 = vsel %vm3403_vm4, %v3397_v10, %v3196_v41 }
 0x17d   : > { %v3216_v48 = vrot.slane %v2904_v39, %v4521_v47  ;;  %v3409_v52 = vsel %vm3403_vm4, %v3400_v55, %v3208_v42  ;;  %v3410_v54 = vsel %vm3403_vm4, %v3401_v17, %v3212_v43  ;;  %v2906_v56 = vcombine.high %v1812_v36, %v1812_v36 }
 0x17e   : > { %v2103_v51 = vpop.f32.mrf.mxu1  ;;  %v2913_v58 = vrot.slane %v1812_v36, %v4511_v25  ;;  %v3407_v60 = vsel %vm3403_vm4, %v3398_v16, %v3200_v46  ;;  %v2028_v2 = vadd.f32 %v4497_v1, %v1957_v37  ;;  %v2475_v12 = vadd.f32 %v4503_v7, %v4507_v11 }
 0x17f   : > { %v3411_v62 = vsel %vm3403_vm4, %v3402_v21, %v3216_v48  ;;  %v2920_v59 = vrot.slane %v2906_v56, %v4511_v25 }
 0x180   : > { %v3902_v4 = vpop.f32.mrf.mxu1  ;;  %v2921_v57 = vcombine.high %v2913_v58, %v2913_v58  ;;  %v2929_v6 = vrot.slane %v2913_v58, %v4511_v25  ;;  %v2107_v8 = vadd.f32 %v2103_v51, %v2028_v2 }
 0x181   : > { %v2922_v13 = vcombine.high %v2920_v59, %v2920_v59  ;;  %v2936_v14 = vrot.slane %v2920_v59, %v4511_v25 }
 0x182   : > { %v2248_v10 = vpop.f32.mrf.mxu1  ;;  %v2943_v15 = vrot.slane %v2921_v57, %v4511_v25  ;;  %v2951_v3 = vcombine.high %v2929_v6, %v2929_v6  ;;  %v3228_v1 = vrot.slane %v2929_v6, %v4521_v47  ;;  %v2956_v16 = vcombine.high %v2107_v8, %v2107_v8 }
 0x183   : > { %v2963_v55 = vrot.slane %v2107_v8, %v4511_v25  ;;  %v2252_v17 = vadd.f32 %v2248_v10, %v2181_v0  ;;  %v2950_v18 = vrot.slane %v2922_v13, %v4511_v25  ;;  %v2952_v19 = vcombine.high %v2936_v14, %v2936_v14 }
 0x184   : > { %v3916_v53 = vpop.f32.mrf.mxu1  ;;  %v2953_v20 = vcombine.high %v2943_v15, %v2943_v15  ;;  %v3232_v21 = vrot.slane %v2943_v15, %v4521_v47  ;;  %v3236_v7 = vrot.slane %v2951_v3, %v4521_v47  ;;  %v3244_v11 = vrot.slane %v2936_v14, %v4521_v47 }
 0x185   : > { %v3413_v22 = vsel %vm3412_vm5, %v3404_v44, %v3228_v1  ;;  %v2970_v23 = vrot.slane %v2956_v16, %v4511_v25  ;;  %v2954_v26 = vcombine.high %v2950_v18, %v2950_v18  ;;  %v3248_v28 = vrot.slane %v2950_v18, %v4521_v47 }
 0x186   : > { %v2398_v24 = vpop.f32.mrf.mxu1  ;;  %v3240_v27 = vrot.slane %v2953_v20, %v4521_v47  ;;  %v3252_v29 = vrot.slane %v2952_v19, %v4521_v47  ;;  %v3414_v30 = vsel %vm3412_vm5, %v3405_v49, %v3232_v21  ;;  %v3415_v31 = vsel %vm3412_vm5, %v3406_v50, %v3236_v7 }
 0x187   : > { %v3417_v32 = vsel %vm3412_vm5, %v3408_v45, %v3244_v11  ;;  %v2971_v33 = vcombine.high %v2963_v55, %v2963_v55  ;;  %v3256_v35 = vrot.slane %v2954_v26, %v4521_v47  ;;  %v3418_v36 = vsel %vm3412_vm5, %v3409_v52, %v3248_v28 }
 0x188   : > { %v3930_v34 = vpop.f32.mrf.mxu1  ;;  %v3416_v63 = vsel %vm3412_vm5, %v3407_v60, %v3240_v27  ;;  %v3419_v37 = vsel %vm3412_vm5, %v3410_v54, %v3252_v29  ;;  %v2972_v38 = vcombine.high %v2970_v23, %v2970_v23  ;;  %v2979_v39 = vrot.slane %v2963_v55, %v4511_v25 }
 0x189   : > { %v2986_v40 = vrot.slane %v2970_v23, %v4511_v25  ;;  %v2993_v41 = vrot.slane %v2971_v33, %v4511_v25  ;;  %v3420_v42 = vsel %vm3412_vm5, %v3411_v62, %v3256_v35  ;;  %v2323_v43 = vadd.f32 %v4501_v5, %v2252_v17 }
 0x18a   : > { %v2542_v61 = vpop.f32.mrf.mxu1  ;;  %v3000_v45 = vrot.slane %v2972_v38, %v4511_v25  ;;  %v3001_v46 = vcombine.high %v2979_v39, %v2979_v39  ;;  %v3268_v51 = vrot.slane %v2979_v39, %v4521_v47 }
 0x18b   : > { %v2546_v44 = vadd.f32 %v2542_v61, %v2475_v12  ;;  %v3002_v48 = vcombine.high %v2986_v40, %v2986_v40  ;;  %v3003_v49 = vcombine.high %v2993_v41, %v2993_v41  ;;  %v3272_v52 = vrot.slane %v2993_v41, %v4521_v47 }
 0x18c   : > { %v3944_v50 = vpop.f32.mrf.mxu1  ;;  %v3284_v54 = vrot.slane %v2986_v40, %v4521_v47  ;;  %v2402_v56 = vadd.f32 %v2398_v24, %v2323_v43  ;;  %v3004_v58 = vcombine.high %v3000_v45, %v3000_v45  ;;  %v3276_v60 = vrot.slane %v3001_v46, %v4521_v47 }
 0x18d   : > { %v3280_v62 = vrot.slane %v3003_v49, %v4521_v47  ;;  %v3288_v5 = vrot.slane %v3000_v45, %v4521_v47  ;;  %v3292_v2 = vrot.slane %v3002_v48, %v4521_v47  ;;  %v3422_v4 = vsel %vm3421_vm6, %v3413_v22, %v3268_v51 }
 0x18e   : > { %v2692_v0 = vpop.f32.mrf.mxu1  ;;  %v3423_v59 = vsel %vm3421_vm6, %v3414_v30, %v3272_v52  ;;  %v3426_v57 = vsel %vm3421_vm6, %v3417_v32, %v3284_v54  ;;  %v3296_v6 = vrot.slane %v3004_v58, %v4521_v47  ;;  %v3424_v8 = vsel %vm3421_vm6, %v3415_v31, %v3276_v60 }
 0x18f   : > { %v3425_v10 = vsel %vm3421_vm6, %v3416_v63, %v3280_v62  ;;  %v3427_v12 = vsel %vm3421_vm6, %v3418_v36, %v3288_v5  ;;  %v3428_v14 = vsel %vm3421_vm6, %v3419_v37, %v3292_v2  ;;  %v3006_v15 = vcombine.high %v2402_v56, %v2402_v56 }
 0x190   : > { %v3958_v13 = vpop.f32.mrf.mxu1  ;;  %v3013_v3 = vrot.slane %v2402_v56, %v4511_v25  ;;  %v2617_v1 = vadd.f32 %v4505_v9, %v2546_v44  ;;  %v3429_v16 = vsel %vm3421_vm6, %v3420_v42, %v3296_v6 }
 0x191   : > { %v3020_v55 = vrot.slane %v3006_v15, %v4511_v25 }
 0x192   : > { %v3021_v17 = vcombine.high %v3013_v3, %v3013_v3  ;;  %v3029_v53 = vrot.slane %v3013_v3, %v4511_v25  ;;  %v2696_v18 = vadd.f32 %v2692_v0, %v2617_v1 }
 0x193   : > { %v3022_v19 = vcombine.high %v3020_v55, %v3020_v55  ;;  %v3036_v20 = vrot.slane %v3020_v55, %v4511_v25 }
 0x194   : > { %v3043_v21 = vrot.slane %v3021_v17, %v4511_v25  ;;  %v3051_v7 = vcombine.high %v3029_v53, %v3029_v53  ;;  %v3308_v11 = vrot.slane %v3029_v53, %v4521_v47  ;;  %v3056_v22 = vcombine.high %v2696_v18, %v2696_v18 }
 0x195   : > { %v3063_v9 = vrot.slane %v2696_v18, %v4511_v25  ;;  %v3050_v23 = vrot.slane %v3022_v19, %v4511_v25  ;;  %v3052_v24 = vcombine.high %v3036_v20, %v3036_v20  ;;  %v3324_v29 = vrot.slane %v3036_v20, %v4521_v47 }
 0x196   : > { %v3053_v26 = vcombine.high %v3043_v21, %v3043_v21  ;;  %v3312_v27 = vrot.slane %v3043_v21, %v4521_v47  ;;  %v3316_v28 = vrot.slane %v3051_v7, %v4521_v47  ;;  %v3431_v30 = vsel %vm3430_vm7, %v3422_v4, %v3308_v11 }
 0x197   : > { %v3070_v31 = vrot.slane %v3056_v22, %v4511_v25  ;;  %v3054_v32 = vcombine.high %v3050_v23, %v3050_v23  ;;  %v3328_v34 = vrot.slane %v3050_v23, %v4521_v47  ;;  %v3332_v35 = vrot.slane %v3052_v24, %v4521_v47 }
 0x198   : > { %v3320_v33 = vrot.slane %v3053_v26, %v4521_v47  ;;  %v3432_v63 = vsel %vm3430_vm7, %v3423_v59, %v3312_v27  ;;  %v3433_v36 = vsel %vm3430_vm7, %v3424_v8, %v3316_v28  ;;  %v3435_v37 = vsel %vm3430_vm7, %v3426_v57, %v3324_v29 }
 0x199   : > { %v3071_v38 = vcombine.high %v3063_v9, %v3063_v9  ;;  %v3336_v39 = vrot.slane %v3054_v32, %v4521_v47  ;;  %v3436_v41 = vsel %vm3430_vm7, %v3427_v12, %v3328_v34  ;;  %v3437_v61 = vsel %vm3430_vm7, %v3428_v14, %v3332_v35 }
 0x19a   : > { %v3434_v40 = vsel %vm3430_vm7, %v3425_v10, %v3320_v33  ;;  %v3072_v42 = vcombine.high %v3070_v31, %v3070_v31  ;;  %v3079_v43 = vrot.slane %v3063_v9, %v4511_v25  ;;  %v3086_v44 = vrot.slane %v3070_v31, %v4511_v25 }
 0x19b   : > { %v3093_v45 = vrot.slane %v3071_v38, %v4511_v25  ;;  %v3438_v46 = vsel %vm3430_vm7, %v3429_v16, %v3336_v39 }
 0x19c   : > { %v3100_v48 = vrot.slane %v3072_v42, %v4511_v25  ;;  %v3101_v49 = vcombine.high %v3079_v43, %v3079_v43  ;;  %v3102_v50 = vcombine.high %v3086_v44, %v3086_v44  ;;  %v3348_v52 = vrot.slane %v3079_v43, %v4521_v47 }
 0x19d   : > { %v3103_v51 = vcombine.high %v3093_v45, %v3093_v45  ;;  %v3352_v54 = vrot.slane %v3093_v45, %v4521_v47  ;;  %v3364_v56 = vrot.slane %v3086_v44, %v4521_v47 }
 0x19e   : > { %v3104_v58 = vcombine.high %v3100_v48, %v3100_v48  ;;  %v3356_v60 = vrot.slane %v3101_v49, %v4521_v47  ;;  %v3368_v25 = vrot.slane %v3100_v48, %v4521_v47  ;;  %v3372_v5 = vrot.slane %v3102_v50, %v4521_v47 }
 0x19f   : > { %v3360_v62 = vrot.slane %v3103_v51, %v4521_v47  ;;  %v3440_v0 = vsel %vm3439_vm8, %v3431_v30, %v3348_v52  ;;  %v3441_v2 = vsel %vm3439_vm8, %v3432_v63, %v3352_v54  ;;  %v3444_v4 = vsel %vm3439_vm8, %v3435_v37, %v3364_v56 }
 0x1a0   : > { %v3376_v59 = vrot.slane %v3104_v58, %v4521_v47  ;;  %v3442_v57 = vsel %vm3439_vm8, %v3433_v36, %v3356_v60  ;;  %v3445_v8 = vsel %vm3439_vm8, %v3436_v41, %v3368_v25  ;;  %3449 = vst.msk [vmem:[%s267_s10] sm:$0xff] %vm3448_vm9, %v3440_v0  ;;  %3450 = vst.msk [vmem:[%s267_s10 + $0x8] sm:$0xff] %vm3448_vm9, %v3441_v2 }
 0x1a1   : > { %v3443_v6 = vsel %vm3439_vm8, %v3434_v40, %v3360_v62  ;;  %3453 = vst.msk [vmem:[%s267_s10 + $0x20] sm:$0xff] %vm3448_vm9, %v3444_v4  ;;  %v3446_v47 = vsel %vm3439_vm8, %v3437_v61, %v3372_v5  ;;  %3451 = vst.msk [vmem:[%s267_s10 + $0x10] sm:$0xff] %vm3448_vm9, %v3442_v57 }
 0x1a2   : > { %3452 = vst.msk [vmem:[%s267_s10 + $0x18] sm:$0xff] %vm3448_vm9, %v3443_v6  ;;  %3454 = vst.msk [vmem:[%s267_s10 + $0x28] sm:$0xff] %vm3448_vm9, %v3445_v8  ;;  %v3447_v10 = vsel %vm3439_vm8, %v3438_v46, %v3376_v59 }
 0x1a3   : > { %3455 = vst.msk [vmem:[%s267_s10 + $0x30] sm:$0xff] %vm3448_vm9, %v3446_v47  ;;  %3456 = vst.msk [vmem:[%s267_s10 + $0x38] sm:$0xff] %vm3448_vm9, %v3447_v10 }
 0x1a4   : > { %4038 = shalt.err (!%p4035_p5)
}
 0x1a5   : > { %s4039_s29 = scalar_lea.hbm %s4700_s13, 1024  ;;  %s4043_s6 = scalar_lea.hbm %s4762_s4, 2048 }
 0x1a6   : > { %p4040_p6 = scmp.ne.s32.totalorder %s4700_s13, %s4039_s29  ;;  %p4044_p10 = scmp.lt.s32.totalorder %s4700_s13, %s4762_s4 }
 0x1a7   : > { %p4045_p11 = scmp.lt.s32.totalorder %s4043_s6, %s4039_s29 }
 0x1a8   : > { %p4041_p7 = pnand %p4040_p6, %p4176_p4 }
 0x1a9   : > { %p4046_p12 = por %p4045_p11, %p4044_p10 }
 0x1aa   : > { %p4042_p9 = pneg %p4041_p7 }
 0x1ac   : > { %p4047_p13 = pnand %p4046_p12, %p4042_p9 }
 0x1ae   : > { %4050 = shalt.err (!%p4047_p13)
}
 0x1af   : > { %s4109_s9 = smov 128   ;;  %s4110_s10 = smov 8  }
 0x1b0   : > { %3961 = dma.vmem_to_hbm [thread:$0]  (%p4176_p4), %s4702_s11, 1024, %s4700_s13, %s4713_s14, %s4109_s9, %s4109_s9, %s4110_s10  }
 0x1b1 PF: > { %p3968_p0 = scmp.ge.s32.totalorder %s4101_s20, 2  ;;  %s3487_s18 = sand.u32 1, %s4081_s15  }
 0x1b2   : > { %s3488_s12 = scalar_lea.sflag [#allocation3], %s3487_s18 }
 0x1b3   : > { %p3964_p1 = pnand %p3968_p0, %p4183_p8 }
 0x1b5   : > { %p3965_p2 = pneg %p3964_p1 }
 0x1b7   : > { %4076 = dma.done.wait (%p3965_p2), %s3488_s12, 1024  }
 0x1b8   : > { %4078 = vsyncadd (%p3965_p2), %s3488_s12, 4294966272  ;;  %s17_s20 = sadd.s32 1, %s4101_s20   ;;  %s4765_s15 = smov %s4085_s16 }
 0x1b9   : > { %p14_p3 = scmp.ge.s32.totalorder %s17_s20, 4   ;;  %s4766_s16 = smov %s4089_s17 }
 0x1ba   : > { %s4767_s17 = smov %s4189_s28  ;;  %s4768_s18 = smov %s4097_s19 }
 0x1bb   : > { %s4769_s19 = smov %s4771_s23  ;;  %16 = sbr.rel (!%p14_p3) target bundleno = 4 (0x4), region = 84 }
 0x1c0   :  { %3493 = vsyncpa [#allocation3], 1 }
 0x1c1   :  { %3495 = vsyncpa [#allocation3 + $0x1], 1 }

</bundles_post_ra>
